<compile_context>
chip_gen: v7x
topology: tpu7x:2x2x1
jax: 0.10.0
libtpu: 0.0.40
codegen_flags: <defaults>
</compile_context>

<pallas_src>
import functools

import jax
import jax.numpy as jnp
from jax.experimental import pallas as pl
from jax.experimental.pallas import tpu as pltpu


def _round_up(x, m):
    return (x + m - 1) // m * m


def _tpu_vmem_capacity_bytes():
    cap = 0
    try:
        cap = int(pltpu.get_tpu_info().vmem_capacity_bytes)
    except Exception:
        cap = 0
    if cap <= 0:
        kind = ""
        try:
            kind = jax.devices()[0].device_kind.lower()
        except Exception:
            pass
        cap = (64 << 20) if "v7" in kind else (128 << 20)
    return cap


def _device_kind():
    try:
        return jax.devices()[0].device_kind.lower()
    except Exception:
        return ""


def _pick_ti(I, wbytes, vmem_cap):
    """Largest preferred intermediate tile that divides I; otherwise pad I up."""
    small_vmem = vmem_cap <= (64 << 20)
    prefs = (256, 128) if (wbytes >= 4 and small_vmem) else (512, 256, 128)
    for cand in prefs:
        if I % cand == 0:
            return cand, I
    if I < 128:
        return I, I  # tiny intermediate: single reduction step, full-dim block
    ti = prefs[0]
    return ti, _round_up(I, ti)


def _vmem_estimate(tm, ti, H, xbytes, wbytes, obytes):
    return (2 * (tm * H * xbytes            # x tile (double-buffered)
                 + 2 * H * ti * wbytes      # gate + up weight blocks
                 + ti * H * wbytes          # down_proj weight block
                 + tm * H * obytes)         # output tile
            + tm * H * 4                    # f32 accumulator scratch
            + 2 * tm * ti * 4               # gate/up f32 matmul results
            + tm * ti * wbytes)             # inter cast before the down matmul


def _pick_tm(M, ti, H, xbytes, wbytes, obytes, vmem_cap, kind):
    if vmem_cap <= (64 << 20):
        tm = 512          # v7x: stay comfortably inside 64 MiB/TC
    elif "v6" in kind:
        tm = 768          # v6e: larger M tile flips weight streaming to MXU-bound
    else:
        tm = 512          # v5e / unknown: compute & bandwidth roughly balanced
    tm = min(tm, max(16, _round_up(M, 16)))
    budget = int(vmem_cap * 0.85)
    while tm > 128 and _vmem_estimate(tm, ti, H, xbytes, wbytes, obytes) > budget:
        tm = max(128, tm - 128)
    return tm


def _zhinao_mlp_kernel(x_ref, wg_ref, wu_ref, wd_ref, o_ref, acc_ref):
    """One (M-tile, I-tile) grid step of the SwiGLU MLP.

    x_ref  : (tm, H)      input rows tile (resident across the I axis)
    wg_ref : (H, ti)      gate_proj weight block for intermediate chunk j
    wu_ref : (H, ti)      up_proj weight block for intermediate chunk j
    wd_ref : (ti, H)      down_proj weight block for intermediate chunk j
    o_ref  : (tm, H)      output rows tile (resident across the I axis)
    acc_ref: (tm, H) f32  partial-sum accumulator
    """
    j = pl.program_id(1)
    x = x_ref[...]

    gate = jnp.dot(x, wg_ref[...], preferred_element_type=jnp.float32)   # (tm, ti)
    up = jnp.dot(x, wu_ref[...], preferred_element_type=jnp.float32)     # (tm, ti)

    # act_fn = silu (hidden_act="silu"): silu(g) = g * sigmoid(g)
    inter = (gate * jax.nn.sigmoid(gate)) * up

    partial = jnp.dot(inter.astype(wd_ref.dtype), wd_ref[...],
                      preferred_element_type=jnp.float32)                # (tm, H)

    @pl.when(j == 0)
    def _():
        acc_ref[...] = partial

    @pl.when(j > 0)
    def _():
        acc_ref[...] += partial

    @pl.when(j == pl.num_programs(1) - 1)
    def _():
        o_ref[...] = acc_ref[...].astype(o_ref.dtype)


@functools.partial(jax.jit, static_argnames=("tm", "ti"))
def zhinao_mlp(x, w_gate, w_up, w_down, *, tm=None, ti=None):
    """x: (..., H); w_gate/w_up: (H, I); w_down: (I, H).

    Computes down_proj(silu(gate_proj(x)) * up_proj(x)).
    """
    orig_shape = x.shape
    H = orig_shape[-1]
    I = w_gate.shape[1]
    assert w_up.shape == (H, I), "up_proj weight shape mismatch"
    assert w_down.shape == (I, H), "down_proj weight shape mismatch"

    # bf16 production path: run x / output in the weight dtype.
    compute_dtype = jnp.bfloat16 if w_gate.dtype == jnp.bfloat16 else x.dtype
    x2d = x.reshape(-1, H).astype(compute_dtype)
    M = x2d.shape[0]

    wbytes = jnp.dtype(w_gate.dtype).itemsize
    xbytes = jnp.dtype(compute_dtype).itemsize
    obytes = xbytes

    vmem_cap = _tpu_vmem_capacity_bytes()
    kind = _device_kind()

    # ---- intermediate tile & (zero-)padding of I.
    if ti is None:
        ti_eff, I_pad = _pick_ti(I, wbytes, vmem_cap)
    else:
        ti_eff = max(1, min(ti, I))
        I_pad = _round_up(I, ti_eff)
    if I_pad != I:
        w_gate = jnp.pad(w_gate, ((0, 0), (0, I_pad - I)))
        w_up = jnp.pad(w_up, ((0, 0), (0, I_pad - I)))
        w_down = jnp.pad(w_down, ((0, I_pad - I), (0, 0)))
    n_i = I_pad // ti_eff

    # ---- row tile & padding of M.
    if tm is None:
        tm_eff = _pick_tm(M, ti_eff, H, xbytes, wbytes, obytes, vmem_cap, kind)
    else:
        tm_eff = min(tm, max(16, _round_up(M, 16)))
    M_pad = _round_up(M, tm_eff)
    if M_pad != M:
        x2d = jnp.pad(x2d, ((0, M_pad - M), (0, 0)))

    est = _vmem_estimate(tm_eff, ti_eff, H, xbytes, wbytes, obytes)
    vmem_limit = min(max(int(est * 1.25), 32 << 20), int(vmem_cap * 0.9))

    cost = pl.CostEstimate(
        flops=6 * M_pad * I_pad * H,
        transcendentals=M_pad * I_pad,
        bytes_accessed=(3 * H * I_pad * wbytes) * (M_pad // tm_eff)
        + M_pad * H * (xbytes + obytes),
    )

    grid = (M_pad // tm_eff, n_i)

    out = pl.pallas_call(
        _zhinao_mlp_kernel,
        out_shape=jax.ShapeDtypeStruct((M_pad, H), compute_dtype),
        grid_spec=pltpu.PrefetchScalarGridSpec(
            num_scalar_prefetch=0,
            grid=grid,
            in_specs=[
                # x rows: resident across the reduction axis (no re-DMA per I-step).
                pl.BlockSpec((tm_eff, H), lambda i, j: (i, 0)),
                # gate_proj weight block, streamed over I.
                pl.BlockSpec((H, ti_eff), lambda i, j: (0, j)),
                # up_proj weight block, streamed over I.
                pl.BlockSpec((H, ti_eff), lambda i, j: (0, j)),
                # down_proj weight block, streamed over I.
                pl.BlockSpec((ti_eff, H), lambda i, j: (j, 0)),
            ],
            out_specs=pl.BlockSpec((tm_eff, H), lambda i, j: (i, 0)),
            scratch_shapes=[pltpu.VMEM((tm_eff, H), jnp.float32)],
        ),
        compiler_params=pltpu.CompilerParams(
            dimension_semantics=("parallel", "arbitrary"),
            vmem_limit_bytes=vmem_limit,
        ),
        cost_estimate=cost,
    )(x2d, w_gate, w_up, w_down)

    if M_pad != M:
        out = out[:M]
    return out.reshape(orig_shape)


def _reference_mlp(x, w_gate, w_up, w_down):
    g = x @ w_gate
    u = x @ w_up
    return (jax.nn.silu(g) * u) @ w_down


if __name__ == "__main__":
    # Small synthetic config consistent with ZhinaoMLP's forward.
    batch, seq, hidden, intermediate = 2, 64, 256, 512

    key = jax.random.PRNGKey(0)
    kx, kg, ku, kd = jax.random.split(key, 4)

    x = jax.random.normal(kx, (batch, seq, hidden), dtype=jnp.float32)
    # Weights stored as (in_features, out_features) for the kernel (== nn.Linear.weight.T).
    w_gate = jax.random.normal(kg, (hidden, intermediate), dtype=jnp.float32) * 0.05
    w_up = jax.random.normal(ku, (hidden, intermediate), dtype=jnp.float32) * 0.05
    w_down = jax.random.normal(kd, (intermediate, hidden), dtype=jnp.float32) * 0.05

    # ---- f32 path (strict check).
    out = jax.block_until_ready(zhinao_mlp(x, w_gate, w_up, w_down))
    ref = _reference_mlp(x, w_gate, w_up, w_down)
    assert out.shape == x.shape
    assert jnp.allclose(out, ref, atol=1e-3, rtol=1e-3), "f32 mismatch vs reference"

    # ---- bf16 production path (f32 accumulation inside the kernel; looser check).
    xb = x.astype(jnp.bfloat16)
    gb = w_gate.astype(jnp.bfloat16)
    ub = w_up.astype(jnp.bfloat16)
    db = w_down.astype(jnp.bfloat16)
    out_b = jax.block_until_ready(zhinao_mlp(xb, gb, ub, db))
    assert out_b.dtype == jnp.bfloat16
    ref_b = _reference_mlp(xb.astype(jnp.float32), gb.astype(jnp.float32),
                           ub.astype(jnp.float32), db.astype(jnp.float32))
    rel_err = (jnp.linalg.norm(out_b.astype(jnp.float32) - ref_b)
               / (jnp.linalg.norm(ref_b) + 1e-6))
    assert rel_err < 2e-2, f"bf16 relative error too high: {rel_err}"

    print("KERNEL_OK")
</pallas_src>

<mosaic_0001>
module attributes {stable_mosaic.version = 11 : i64} {
  func.func @_zhinao_mlp_kernel(%arg0: i32, %arg1: i32, %arg2: memref<128x256xf32, #tpu.memory_space<vmem>>, %arg3: memref<256x512xf32, #tpu.memory_space<vmem>>, %arg4: memref<256x512xf32, #tpu.memory_space<vmem>>, %arg5: memref<512x256xf32, #tpu.memory_space<vmem>>, %arg6: memref<128x256xf32, #tpu.memory_space<vmem>>, %arg7: memref<128x256xf32, #tpu.memory_space<vmem>>) attributes {dimension_semantics = [#tpu.dimension_semantics<parallel>, #tpu.dimension_semantics<arbitrary>], iteration_bounds = array<i64: 1, 1>, scalar_prefetch = 0 : i64, scratch_operands = 1 : i64, tpu.core_type = #tpu.core_type<tc>, window_params = [{transform_indices = @transform_0, window_bounds = array<i64: 128, 256>}, {transform_indices = @transform_1, window_bounds = array<i64: 256, 512>}, {transform_indices = @transform_2, window_bounds = array<i64: 256, 512>}, {transform_indices = @transform_3, window_bounds = array<i64: 512, 256>}, {transform_indices = @transform_4, window_bounds = array<i64: 128, 256>}]} {
    %c0 = arith.constant 0 : index
    %c0_0 = arith.constant 0 : index
    %0 = vector.load %arg2[%c0, %c0_0] : memref<128x256xf32, #tpu.memory_space<vmem>>, vector<128x256xf32>
    %c0_1 = arith.constant 0 : index
    %c0_2 = arith.constant 0 : index
    %1 = vector.load %arg3[%c0_1, %c0_2] : memref<256x512xf32, #tpu.memory_space<vmem>>, vector<256x512xf32>
    %cst = arith.constant dense<0.000000e+00> : vector<128x512xf32>
    %2 = tpu.matmul %0, %1, %cst {dimension_numbers = #tpu.dot_dimension_numbers<[1], [0], [0], [1], [0, 0, 1, 1], [], []>} : vector<128x256xf32>, vector<256x512xf32>, vector<128x512xf32> -> vector<128x512xf32>
    %c0_3 = arith.constant 0 : index
    %c0_4 = arith.constant 0 : index
    %3 = vector.load %arg4[%c0_3, %c0_4] : memref<256x512xf32, #tpu.memory_space<vmem>>, vector<256x512xf32>
    %cst_5 = arith.constant dense<0.000000e+00> : vector<128x512xf32>
    %4 = tpu.matmul %0, %3, %cst_5 {dimension_numbers = #tpu.dot_dimension_numbers<[1], [0], [0], [1], [0, 0, 1, 1], [], []>} : vector<128x256xf32>, vector<256x512xf32>, vector<128x512xf32> -> vector<128x512xf32>
    %5 = arith.negf %2 : vector<128x512xf32>
    %6 = math.exp %5 : vector<128x512xf32>
    %cst_6 = arith.constant 1.000000e+00 : f32
    %7 = vector.broadcast %cst_6 : f32 to vector<128x512xf32>
    %8 = arith.addf %7, %6 : vector<128x512xf32>
    %9 = arith.divf %7, %8 : vector<128x512xf32>
    %10 = arith.mulf %2, %9 : vector<128x512xf32>
    %11 = arith.mulf %10, %4 : vector<128x512xf32>
    %c0_7 = arith.constant 0 : index
    %c0_8 = arith.constant 0 : index
    %12 = vector.load %arg5[%c0_7, %c0_8] : memref<512x256xf32, #tpu.memory_space<vmem>>, vector<512x256xf32>
    %cst_9 = arith.constant dense<0.000000e+00> : vector<128x256xf32>
    %13 = tpu.matmul %11, %12, %cst_9 {dimension_numbers = #tpu.dot_dimension_numbers<[1], [0], [0], [1], [0, 0, 1, 1], [], []>} : vector<128x512xf32>, vector<512x256xf32>, vector<128x256xf32> -> vector<128x256xf32>
    %c0_i32 = arith.constant 0 : i32
    %14 = arith.cmpi eq, %arg1, %c0_i32 : i32
    %15 = arith.extui %14 : i1 to i32
    %c0_i32_10 = arith.constant 0 : i32
    %16 = arith.cmpi ne, %15, %c0_i32_10 : i32
    scf.if %16 {
      %c0_15 = arith.constant 0 : index
      %c0_16 = arith.constant 0 : index
      %23 = vector.load %arg7[%c0_15, %c0_16] : memref<128x256xf32, #tpu.memory_space<vmem>>, vector<128x256xf32>
      tpu.vector_store %arg7[%c0_15, %c0_16], %13 {strides = array<i32>} : memref<128x256xf32, #tpu.memory_space<vmem>>, vector<128x256xf32>,
    } else {
    }
    %c0_i32_11 = arith.constant 0 : i32
    %17 = arith.cmpi sgt, %arg1, %c0_i32_11 : i32
    %18 = arith.extui %17 : i1 to i32
    %c0_i32_12 = arith.constant 0 : i32
    %19 = arith.cmpi ne, %18, %c0_i32_12 : i32
    scf.if %19 {
      %c0_15 = arith.constant 0 : index
      %c0_16 = arith.constant 0 : index
      %23 = vector.load %arg7[%c0_15, %c0_16] : memref<128x256xf32, #tpu.memory_space<vmem>>, vector<128x256xf32>
      %24 = arith.addf %23, %13 : vector<128x256xf32>
      %c0_17 = arith.constant 0 : index
      %c0_18 = arith.constant 0 : index
      %25 = vector.load %arg7[%c0_17, %c0_18] : memref<128x256xf32, #tpu.memory_space<vmem>>, vector<128x256xf32>
      tpu.vector_store %arg7[%c0_17, %c0_18], %24 {strides = array<i32>} : memref<128x256xf32, #tpu.memory_space<vmem>>, vector<128x256xf32>,
    } else {
    }
    %c0_i32_13 = arith.constant 0 : i32
    %20 = arith.cmpi eq, %arg1, %c0_i32_13 : i32
    %21 = arith.extui %20 : i1 to i32
    %c0_i32_14 = arith.constant 0 : i32
    %22 = arith.cmpi ne, %21, %c0_i32_14 : i32
    scf.if %22 {
      %c0_15 = arith.constant 0 : index
      %c0_16 = arith.constant 0 : index
      %23 = vector.load %arg7[%c0_15, %c0_16] : memref<128x256xf32, #tpu.memory_space<vmem>>, vector<128x256xf32>
      %c0_17 = arith.constant 0 : index
      %c0_18 = arith.constant 0 : index
      %24 = vector.load %arg6[%c0_17, %c0_18] : memref<128x256xf32, #tpu.memory_space<vmem>>, vector<128x256xf32>
      tpu.vector_store %arg6[%c0_17, %c0_18], %23 {strides = array<i32>} : memref<128x256xf32, #tpu.memory_space<vmem>>, vector<128x256xf32>,
    } else {
    }
    return
  }
  func.func @transform_0(%arg0: i32, %arg1: i32) -> (i32, i32) {
    %c0_i32 = arith.constant 0 : i32
    %c0_i32_0 = arith.constant 0 : i32
    return %arg0, %c0_i32 : i32, i32
  }
  func.func @transform_1(%arg0: i32, %arg1: i32) -> (i32, i32) {
    %c0_i32 = arith.constant 0 : i32
    %c0_i32_0 = arith.constant 0 : i32
    return %c0_i32, %arg1 : i32, i32
  }
  func.func @transform_2(%arg0: i32, %arg1: i32) -> (i32, i32) {
    %c0_i32 = arith.constant 0 : i32
    %c0_i32_0 = arith.constant 0 : i32
    return %c0_i32, %arg1 : i32, i32
  }
  func.func @transform_3(%arg0: i32, %arg1: i32) -> (i32, i32) {
    %c0_i32 = arith.constant 0 : i32
    %c0_i32_0 = arith.constant 0 : i32
    return %arg1, %c0_i32 : i32, i32
  }
  func.func @transform_4(%arg0: i32, %arg1: i32) -> (i32, i32) {
    %c0_i32 = arith.constant 0 : i32
    %c0_i32_0 = arith.constant 0 : i32
    return %arg0, %c0_i32 : i32, i32
  }
}

</mosaic_0001>

<bundles_post_ra>
// kernel: zhinao_mlp.1
= control target key start
LH: loop header
LB: loop body
LE: loop exit
PB: predicated region body
PF: predicated region fallthrough
CT: control target
= control target key end

     0   :  { %9 = vsyncpa [#allocation4], 0  ;;  %s3712_s0 = inlined_call_operand.hbm [shape: f32[128,256], index: 0, kind: input, shape index: {}]   ;;  %s3713_s1 = inlined_call_operand.hbm [shape: f32[256,512], index: 1, kind: input, shape index: {}]   ;;  %s3714_s2 = inlined_call_operand.hbm [shape: f32[256,512], index: 2, kind: input, shape index: {}]   ;;  %s3715_s3 = inlined_call_operand.hbm [shape: f32[512,256], index: 3, kind: input, shape index: {}]   ;;  %s3716_s4 = inlined_call_operand.hbm [shape: f32[128,256], index: 4, kind: output, shape index: {}]  }
   0x1   :  { %10 = vsyncpa [#allocation7], 0 }
   0x2   :  { %11 = vsyncpa [#allocation10], 0 }
   0x3   :  { %12 = vsyncpa [#allocation5], 0  ;;  %s3054_s15 = smov [#allocation6]   ;;  %s2936_s19 = scalar_lea.hbm %s3713_s1, 16384 }
   0x4   :  { %s30_s16 = sshll.u32 %s3054_s15, 4  ;;  %p2937_p0 = scmp.ne.s32.totalorder %s3713_s1, %s2936_s19  ;;  %s31_s16 = int_to_ptr.vmem [resolvable:$true] %s30_s16 }
   0x5   :  { %p2940_p1 = scmp.lt.u32.totalorder %s2936_s19, %s3713_s1 }
   0x7   :  { %p2942_p2 = pnand %p2940_p1, %p2937_p0 }
   0x9   :  { %2945 = shalt.err (!%p2942_p2)
}
   0xa   :  { %s2946_s24 = scalar_lea.vmem %s31_s16, 16384  ;;  %p2951_p4 = scmp.lt.s32.totalorder %s31_s16, %s31_s16 }
   0xb   :  { %p2947_p3 = scmp.ne.s32.totalorder %s31_s16, %s2946_s24  ;;  %p2952_p5 = scmp.lt.s32.totalorder %s2946_s24, %s2946_s24 }
   0xd   :  { %p2953_p6 = por %p2952_p5, %p2951_p4 }
   0xf   :  { %p2954_p7 = pnand %p2953_p6, %p2947_p3 }
  0x11   :  { %2957 = shalt.err (!%p2954_p7)
}
  0x12   :  { %s3055_s25 = smov 512   ;;  %s3056_s26 = smov 32  }
  0x13   :  { %36 = dma.hbm_to_vmem [thread:$0]  %s3713_s1, 16384, %s31_s16, [#allocation7], %s3055_s25, %s3055_s25, %s3056_s26  }
  0x14   :  { %s3057_s29 = smov [#allocation3]   ;;  %s2958_s7 = scalar_lea.hbm %s3712_s0, 4096 }
  0x15   :  { %s18_s30 = sshll.u32 %s3057_s29, 4  ;;  %p2959_p8 = scmp.ne.s32.totalorder %s3712_s0, %s2958_s7  ;;  %s19_s30 = int_to_ptr.vmem [resolvable:$true] %s18_s30 }
  0x16   :  { %p2962_p9 = scmp.lt.u32.totalorder %s2958_s7, %s3712_s0 }
  0x18   :  { %p2964_p10 = pnand %p2962_p9, %p2959_p8 }
  0x1a   :  { %2967 = shalt.err (!%p2964_p10)
}
  0x1b   :  { %s2968_s12 = scalar_lea.vmem %s19_s30, 4096  ;;  %p2973_p12 = scmp.lt.s32.totalorder %s19_s30, %s19_s30 }
  0x1c   :  { %p2969_p11 = scmp.ne.s32.totalorder %s19_s30, %s2968_s12  ;;  %p2974_p13 = scmp.lt.s32.totalorder %s2968_s12, %s2968_s12 }
  0x1e   :  { %p2975_p0 = por %p2974_p13, %p2973_p12 }
  0x20   :  { %p2976_p1 = pnand %p2975_p0, %p2969_p11 }
  0x22   :  { %2979 = shalt.err (!%p2976_p1)
}
  0x23   :  { %s3058_s1 = smov 256   ;;  %s3059_s13 = smov 16  }
  0x24   :  { %24 = dma.hbm_to_vmem [thread:$0]  %s3712_s0, 4096, %s19_s30, [#allocation4], %s3058_s1, %s3058_s1, %s3059_s13  }
  0x25   :  { %s3060_s16 = smov [#allocation8]   ;;  %s3061_s18 = smov [#allocation9]  }
  0x26   :  { %s42_s17 = sshll.u32 %s3060_s16, 4  ;;  %s54_s19 = sshll.u32 %s3061_s18, 4  ;;  %s43_s17 = int_to_ptr.vmem [resolvable:$true] %s42_s17  ;;  %s3118_s19 = int_to_ptr.vmem [resolvable:$true] %s54_s19 }
  0x27   :  { %s2980_s22 = scalar_lea.hbm %s3714_s2, 16384 }
  0x28   :  { %p2981_p2 = scmp.ne.s32.totalorder %s3714_s2, %s2980_s22  ;;  %p2984_p3 = scmp.lt.u32.totalorder %s2980_s22, %s3714_s2 }
  0x2a   :  { %p2986_p4 = pnand %p2984_p3, %p2981_p2 }
  0x2c   :  { %2989 = shalt.err (!%p2986_p4)
}
  0x2d   :  { %s2990_s0 = scalar_lea.vmem %s43_s17, 16384  ;;  %p2995_p6 = scmp.lt.s32.totalorder %s43_s17, %s43_s17 }
  0x2e   :  { %p2991_p5 = scmp.ne.s32.totalorder %s43_s17, %s2990_s0  ;;  %p2996_p7 = scmp.lt.s32.totalorder %s2990_s0, %s2990_s0 }
  0x30   :  { %p2997_p8 = por %p2996_p7, %p2995_p6 }
  0x32   :  { %p2998_p9 = pnand %p2997_p8, %p2991_p5 }
  0x34   :  { %3001 = shalt.err (!%p2998_p9)
}
  0x35   :  { %48 = dma.hbm_to_vmem [thread:$0]  %s3714_s2, 16384, %s43_s17, [#allocation7], %s3055_s25, %s3055_s25, %s3056_s26  }
  0x36   :  { %s3002_s7 = scalar_lea.hbm %s3715_s3, 16384 }
  0x37   :  { %p3003_p10 = scmp.ne.s32.totalorder %s3715_s3, %s3002_s7  ;;  %p3006_p11 = scmp.lt.u32.totalorder %s3002_s7, %s3715_s3 }
  0x39   :  { %p3008_p12 = pnand %p3006_p11, %p3003_p10 }
  0x3b   :  { %3011 = shalt.err (!%p3008_p12)
}
  0x3c   :  { %s3012_s12 = scalar_lea.vmem %s3118_s19, 16384  ;;  %p3017_p0 = scmp.lt.s32.totalorder %s3118_s19, %s3118_s19 }
  0x3d   :  { %p3013_p13 = scmp.ne.s32.totalorder %s3118_s19, %s3012_s12  ;;  %p3018_p1 = scmp.lt.s32.totalorder %s3012_s12, %s3012_s12 }
  0x3f   :  { %p3019_p2 = por %p3018_p1, %p3017_p0 }
  0x41   :  { %p3020_p3 = pnand %p3019_p2, %p3013_p13 }
  0x43   :  { %3023 = shalt.err (!%p3020_p3)
}
  0x44   :  { %60 = dma.hbm_to_vmem [thread:$0]  %s3715_s3, 16384, %s3118_s19, [#allocation10], %s3058_s1, %s3058_s1, %s3059_s13  }
  0x45   :  { %3046 = dma.done.wait [#allocation4], 4096  }
  0x46   :  { %3047 = vsyncadd [#allocation4], 4294963200 }
  0x47   :  { %3048 = dma.done.wait [#allocation7], 32768  }
  0x48   :  { %3049 = vsyncadd [#allocation7], 4294934528 }
  0x49   :  { %3050 = dma.done.wait [#allocation10], 16384  }
  0x4a   :  { %3051 = vsyncadd [#allocation10], 4294950912  ;;  %v106_v0 = vld [vmem:[#allocation6 + $0x8] sm:$0xff]  ;;  %v105_v2 = vld [vmem:[#allocation6] sm:$0xff]  ;;  %s3062_s3 = smov [#allocation11]  }
  0x4b   :  { %v110_v1 = vld [vmem:[#allocation6 + $0x28] sm:$0xff]  ;;  %v109_v4 = vld [vmem:[#allocation6 + $0x20] sm:$0xff]  ;;  %s2175_s26 = sshll.u32 %s3062_s3, 4  ;;  %s2176_s26 = int_to_ptr.vmem [resolvable:$true] %s2175_s26 }
  0x4c   :  { %v2253_v3 = vpack.c.bf16 %v110_v1, %v106_v0  ;;  %v114_v5 = vld [vmem:[#allocation6 + $0x48] sm:$0xff]  ;;  %v2255_v7 = vpack.c.bf16 %v109_v4, %v105_v2  ;;  %v113_v9 = vld [vmem:[#allocation6 + $0x40] sm:$0xff]  ;;  %s3024_s14 = scalar_lea.vmem %s2176_s26, 4096  ;;  %p3029_p5 = scmp.lt.s32.totalorder %s2176_s26, %s2176_s26 }
  0x4d   :  { %v118_v6 = vld [vmem:[#allocation6 + $0x68] sm:$0xff]  ;;  %v117_v10 = vld [vmem:[#allocation6 + $0x60] sm:$0xff]  ;;  %p3025_p4 = scmp.ne.s32.totalorder %s2176_s26, %s3024_s14  ;;  %p3030_p6 = scmp.lt.s32.totalorder %s3024_s14, %s3024_s14 }
  0x4e   :  { %v2257_v8 = vpack.c.bf16 %v118_v6, %v114_v5  ;;  %v122_v11 = vld [vmem:[#allocation6 + $0x88] sm:$0xff]  ;;  %2254 = vmatprep.subr.bf16.mxu1 %v2253_v3  ;;  %v2259_v13 = vpack.c.bf16 %v117_v10, %v113_v9  ;;  %v121_v15 = vld [vmem:[#allocation6 + $0x80] sm:$0xff] }
  0x4f   :  { %v126_v12 = vld [vmem:[#allocation6 + $0xa8] sm:$0xff]  ;;  %2256 = vmatpush1.bf16.msra.mxu1 %v2255_v7  ;;  %v125_v16 = vld [vmem:[#allocation6 + $0xa0] sm:$0xff]  ;;  %p3031_p7 = por %p3030_p6, %p3029_p5 }
  0x50   :  { %2258 = vmatprep.subr.bf16.mxu1 %v2257_v8  ;;  %v2261_v14 = vpack.c.bf16 %v126_v12, %v122_v11  ;;  %v130_v17 = vld [vmem:[#allocation6 + $0xc8] sm:$0xff]  ;;  %v2263_v19 = vpack.c.bf16 %v125_v16, %v121_v15  ;;  %v129_v21 = vld [vmem:[#allocation6 + $0xc0] sm:$0xff] }
  0x51   :  { %v134_v18 = vld [vmem:[#allocation6 + $0xe8] sm:$0xff]  ;;  %v133_v22 = vld [vmem:[#allocation6 + $0xe0] sm:$0xff]  ;;  %p3032_p8 = pnand %p3031_p7, %p3025_p4 }
  0x52   :  { %v2265_v20 = vpack.c.bf16 %v134_v18, %v130_v17  ;;  %v138_v23 = vld [vmem:[#allocation6 + $0x108] sm:$0xff]  ;;  %v555_v28 = vld [vmem:[#allocation8] sm:$0xff]  ;;  %v2267_v30 = vpack.c.bf16 %v133_v22, %v129_v21 }
  0x53   :  { %2260 = vmatpush1.bf16.msra.mxu1 %v2259_v13  ;;  %v142_v24 = vld [vmem:[#allocation6 + $0x128] sm:$0xff]  ;;  %v559_v29 = vld [vmem:[#allocation8 + $0x20] sm:$0xff] }
  0x54   :  { %2262 = vmatprep.subr.bf16.mxu1 %v2261_v14  ;;  %v556_v25 = vld [vmem:[#allocation8 + $0x8] sm:$0xff]  ;;  %v137_v31 = vld [vmem:[#allocation6 + $0x100] sm:$0xff]  ;;  %v2383_v32 = vpack.c.bf16 %v559_v29, %v555_v28  ;;  %v2269_v34 = vpack.c.bf16 %v142_v24, %v138_v23 }
  0x55   :  { %v560_v26 = vld [vmem:[#allocation8 + $0x28] sm:$0xff]  ;;  %v141_v35 = vld [vmem:[#allocation6 + $0x120] sm:$0xff] }
  0x56   :  { %v2381_v27 = vpack.c.bf16 %v560_v26, %v556_v25  ;;  %v564_v33 = vld [vmem:[#allocation8 + $0x48] sm:$0xff]  ;;  %v563_v40 = vld [vmem:[#allocation8 + $0x40] sm:$0xff]  ;;  %v2271_v45 = vpack.c.bf16 %v141_v35, %v137_v31 }
  0x57   :  { %2264 = vmatpush1.bf16.msra.mxu1 %v2263_v19  ;;  %v146_v36 = vld [vmem:[#allocation6 + $0x148] sm:$0xff]  ;;  %v567_v41 = vld [vmem:[#allocation8 + $0x60] sm:$0xff] }
  0x58   :  { %2266 = vmatprep.subr.bf16.mxu1 %v2265_v20  ;;  %2382 = vmatprep.subr.bf16.mxu0 %v2381_v27  ;;  %v568_v37 = vld [vmem:[#allocation8 + $0x68] sm:$0xff]  ;;  %v2387_v42 = vpack.c.bf16 %v567_v41, %v563_v40  ;;  %v145_v46 = vld [vmem:[#allocation6 + $0x140] sm:$0xff] }
  0x59   :  { %v150_v38 = vld [vmem:[#allocation6 + $0x168] sm:$0xff]  ;;  %2384 = vmatpush1.bf16.msra.mxu0 %v2383_v32  ;;  %v2385_v39 = vpack.c.bf16 %v568_v37, %v564_v33  ;;  %v571_v48 = vld [vmem:[#allocation8 + $0x80] sm:$0xff] }
  0x5a   :  { %v572_v43 = vld [vmem:[#allocation8 + $0x88] sm:$0xff]  ;;  %v2273_v49 = vpack.c.bf16 %v150_v38, %v146_v36  ;;  %v149_v50 = vld [vmem:[#allocation6 + $0x160] sm:$0xff] }
  0x5b   :  { %v576_v44 = vld [vmem:[#allocation8 + $0xa8] sm:$0xff]  ;;  %2268 = vmatpush1.bf16.msra.mxu1 %v2267_v30  ;;  %2386 = vmatprep.subr.bf16.mxu0 %v2385_v39  ;;  %v575_v52 = vld [vmem:[#allocation8 + $0xa0] sm:$0xff]  ;;  %v2275_v60 = vpack.c.bf16 %v149_v50, %v145_v46 }
  0x5c   :  { %v2389_v47 = vpack.c.bf16 %v576_v44, %v572_v43  ;;  %2270 = vmatprep.subr.bf16.mxu1 %v2269_v34  ;;  %v154_v51 = vld [vmem:[#allocation6 + $0x188] sm:$0xff]  ;;  %v2391_v54 = vpack.c.bf16 %v575_v52, %v571_v48  ;;  %v579_v58 = vld [vmem:[#allocation8 + $0xc0] sm:$0xff] }
  0x5d   :  { %v158_v53 = vld [vmem:[#allocation6 + $0x1a8] sm:$0xff]  ;;  %2388 = vmatpush1.bf16.msra.mxu0 %v2387_v42  ;;  %v583_v59 = vld [vmem:[#allocation8 + $0xe0] sm:$0xff] }
  0x5e   :  { %v580_v55 = vld [vmem:[#allocation8 + $0xc8] sm:$0xff]  ;;  %2390 = vmatprep.subr.bf16.mxu0 %v2389_v47  ;;  %v2277_v62 = vpack.c.bf16 %v158_v53, %v154_v51  ;;  %v153_v63 = vld [vmem:[#allocation6 + $0x180] sm:$0xff]  ;;  %v2395_v4 = vpack.c.bf16 %v583_v59, %v579_v58 }
  0x5f   :  { %v584_v56 = vld [vmem:[#allocation8 + $0xe8] sm:$0xff]  ;;  %2272 = vmatpush1.bf16.msra.mxu1 %v2271_v45  ;;  %v157_v0 = vld [vmem:[#allocation6 + $0x1a0] sm:$0xff] }
  0x60   :  { %v2393_v57 = vpack.c.bf16 %v584_v56, %v580_v55  ;;  %v588_v61 = vld [vmem:[#allocation8 + $0x108] sm:$0xff]  ;;  %2274 = vmatprep.subr.bf16.mxu1 %v2273_v49  ;;  %v587_v6 = vld [vmem:[#allocation8 + $0x100] sm:$0xff]  ;;  %v2279_v8 = vpack.c.bf16 %v157_v0, %v153_v63 }
  0x61   :  { %v592_v1 = vld [vmem:[#allocation8 + $0x128] sm:$0xff]  ;;  %2392 = vmatpush1.bf16.msra.mxu0 %v2391_v54  ;;  %v591_v7 = vld [vmem:[#allocation8 + $0x120] sm:$0xff] }
  0x62   :  { %v162_v2 = vld [vmem:[#allocation6 + $0x1c8] sm:$0xff]  ;;  %2394 = vmatprep.subr.bf16.mxu0 %v2393_v57  ;;  %v2397_v5 = vpack.c.bf16 %v592_v1, %v588_v61  ;;  %v161_v12 = vld [vmem:[#allocation6 + $0x1c0] sm:$0xff]  ;;  %v2399_v16 = vpack.c.bf16 %v591_v7, %v587_v6 }
  0x63   :  { %v166_v3 = vld [vmem:[#allocation6 + $0x1e8] sm:$0xff]  ;;  %2276 = vmatpush1.bf16.msra.mxu1 %v2275_v60  ;;  %v165_v13 = vld [vmem:[#allocation6 + $0x1e0] sm:$0xff] }
  0x64   :  { %v596_v9 = vld [vmem:[#allocation8 + $0x148] sm:$0xff]  ;;  %2278 = vmatprep.subr.bf16.mxu1 %v2277_v62  ;;  %v2281_v11 = vpack.c.bf16 %v166_v3, %v162_v2  ;;  %v595_v18 = vld [vmem:[#allocation8 + $0x140] sm:$0xff]  ;;  %v2283_v20 = vpack.c.bf16 %v165_v13, %v161_v12 }
  0x65   :  { %v600_v10 = vld [vmem:[#allocation8 + $0x168] sm:$0xff]  ;;  %2396 = vmatpush1.bf16.msra.mxu0 %v2395_v4  ;;  %v599_v19 = vld [vmem:[#allocation8 + $0x160] sm:$0xff] }
  0x66   :  { %v170_v14 = vld [vmem:[#allocation6 + $0x208] sm:$0xff]  ;;  %2398 = vmatprep.subr.bf16.mxu0 %v2397_v5  ;;  %v2401_v17 = vpack.c.bf16 %v600_v10, %v596_v9  ;;  %v169_v24 = vld [vmem:[#allocation6 + $0x200] sm:$0xff]  ;;  %v2403_v28 = vpack.c.bf16 %v599_v19, %v595_v18 }
  0x67   :  { %v174_v15 = vld [vmem:[#allocation6 + $0x228] sm:$0xff]  ;;  %2280 = vmatpush1.bf16.msra.mxu1 %v2279_v8  ;;  %v173_v25 = vld [vmem:[#allocation6 + $0x220] sm:$0xff] }
  0x68   :  { %v604_v21 = vld [vmem:[#allocation8 + $0x188] sm:$0xff]  ;;  %2282 = vmatprep.subr.bf16.mxu1 %v2281_v11  ;;  %v2285_v23 = vpack.c.bf16 %v174_v15, %v170_v14  ;;  %v603_v30 = vld [vmem:[#allocation8 + $0x180] sm:$0xff]  ;;  %v2287_v32 = vpack.c.bf16 %v173_v25, %v169_v24 }
  0x69   :  { %v608_v22 = vld [vmem:[#allocation8 + $0x1a8] sm:$0xff]  ;;  %2400 = vmatpush1.bf16.msra.mxu0 %v2399_v16  ;;  %v607_v31 = vld [vmem:[#allocation8 + $0x1a0] sm:$0xff] }
  0x6a   :  { %v178_v26 = vld [vmem:[#allocation6 + $0x248] sm:$0xff]  ;;  %2402 = vmatprep.subr.bf16.mxu0 %v2401_v17  ;;  %v2405_v29 = vpack.c.bf16 %v608_v22, %v604_v21  ;;  %v177_v36 = vld [vmem:[#allocation6 + $0x240] sm:$0xff]  ;;  %v2407_v41 = vpack.c.bf16 %v607_v31, %v603_v30 }
  0x6b   :  { %v182_v27 = vld [vmem:[#allocation6 + $0x268] sm:$0xff]  ;;  %2284 = vmatpush1.bf16.msra.mxu1 %v2283_v20  ;;  %v181_v37 = vld [vmem:[#allocation6 + $0x260] sm:$0xff] }
  0x6c   :  { %v612_v33 = vld [vmem:[#allocation8 + $0x1c8] sm:$0xff]  ;;  %2286 = vmatprep.subr.bf16.mxu1 %v2285_v23  ;;  %v2289_v35 = vpack.c.bf16 %v182_v27, %v178_v26  ;;  %v611_v43 = vld [vmem:[#allocation8 + $0x1c0] sm:$0xff]  ;;  %v2291_v45 = vpack.c.bf16 %v181_v37, %v177_v36 }
  0x6d   :  { %v616_v34 = vld [vmem:[#allocation8 + $0x1e8] sm:$0xff]  ;;  %2404 = vmatpush1.bf16.msra.mxu0 %v2403_v28  ;;  %v615_v44 = vld [vmem:[#allocation8 + $0x1e0] sm:$0xff] }
  0x6e   :  { %v3155_v38 = vld [vmem:[#allocation3 + $0x8] sm:$0xff]  ;;  %2406 = vmatprep.subr.bf16.mxu0 %v2405_v29  ;;  %v2409_v42 = vpack.c.bf16 %v616_v34, %v612_v33  ;;  %v185_v49 = vld [vmem:[#allocation6 + $0x280] sm:$0xff]  ;;  %v2411_v53 = vpack.c.bf16 %v615_v44, %v611_v43 }
  0x6f   :  { %v186_v39 = vld [vmem:[#allocation6 + $0x288] sm:$0xff]  ;;  %297 = vmatprep.mubr.f32.mxu1 %v3155_v38  ;;  %747 = vmatprep.mubr.f32.mxu0 %v3155_v38  ;;  %v189_v50 = vld [vmem:[#allocation6 + $0x2a0] sm:$0xff] }
  0x70   :  { %v190_v40 = vld [vmem:[#allocation6 + $0x2a8] sm:$0xff]  ;;  %2288 = vmatpush1.bf16.msra.mxu1 %v2287_v32  ;;  %v619_v55 = vld [vmem:[#allocation8 + $0x200] sm:$0xff]  ;;  %v2295_v57 = vpack.c.bf16 %v189_v50, %v185_v49  ;;  %v112_v49 = vld [vmem:[#allocation6 + $0x38] sm:$0xff] }
  0x71   :  { %v620_v46 = vld [vmem:[#allocation8 + $0x208] sm:$0xff]  ;;  %2290 = vmatprep.subr.bf16.mxu1 %v2289_v35  ;;  %v2293_v48 = vpack.c.bf16 %v190_v40, %v186_v39  ;;  %2408 = vmatpush1.bf16.msra.mxu0 %v2407_v41  ;;  %v623_v56 = vld [vmem:[#allocation8 + $0x220] sm:$0xff] }
  0x72   :  { %v624_v47 = vld [vmem:[#allocation8 + $0x228] sm:$0xff]  ;;  %2410 = vmatprep.subr.bf16.mxu0 %v2409_v42  ;;  %v193_v61 = vld [vmem:[#allocation6 + $0x2c0] sm:$0xff]  ;;  %v2415_v1 = vpack.c.bf16 %v623_v56, %v619_v55 }
  0x73   :  { %v194_v51 = vld [vmem:[#allocation6 + $0x2c8] sm:$0xff]  ;;  %v2413_v54 = vpack.c.bf16 %v624_v47, %v620_v46  ;;  %v197_v62 = vld [vmem:[#allocation6 + $0x2e0] sm:$0xff] }
  0x74   :  { %v198_v52 = vld [vmem:[#allocation6 + $0x2e8] sm:$0xff]  ;;  %2292 = vmatpush1.bf16.msra.mxu1 %v2291_v45  ;;  %v627_v3 = vld [vmem:[#allocation8 + $0x240] sm:$0xff]  ;;  %v2299_v5 = vpack.c.bf16 %v197_v62, %v193_v61  ;;  %v120_v61 = vld [vmem:[#allocation6 + $0x78] sm:$0xff] }
  0x75   :  { %v628_v58 = vld [vmem:[#allocation8 + $0x248] sm:$0xff]  ;;  %2294 = vmatprep.subr.bf16.mxu1 %v2293_v48  ;;  %v2297_v60 = vpack.c.bf16 %v198_v52, %v194_v51  ;;  %2412 = vmatpush1.bf16.msra.mxu0 %v2411_v53  ;;  %v631_v4 = vld [vmem:[#allocation8 + $0x260] sm:$0xff]  ;;  %v108_v48 = vld [vmem:[#allocation6 + $0x18] sm:$0xff] }
  0x76   :  { %v632_v59 = vld [vmem:[#allocation8 + $0x268] sm:$0xff]  ;;  %2414 = vmatprep.subr.bf16.mxu0 %v2413_v54  ;;  %v201_v9 = vld [vmem:[#allocation6 + $0x300] sm:$0xff]  ;;  %v2419_v13 = vpack.c.bf16 %v631_v4, %v627_v3 }
  0x77   :  { %v202_v63 = vld [vmem:[#allocation6 + $0x308] sm:$0xff]  ;;  %v2417_v2 = vpack.c.bf16 %v632_v59, %v628_v58  ;;  %v205_v10 = vld [vmem:[#allocation6 + $0x320] sm:$0xff]  ;;  %v107_v58 = vld [vmem:[#allocation6 + $0x10] sm:$0xff] }
  0x78   :  { %v206_v0 = vld [vmem:[#allocation6 + $0x328] sm:$0xff]  ;;  %2296 = vmatpush1.bf16.msra.mxu1 %v2295_v57  ;;  %v635_v15 = vld [vmem:[#allocation8 + $0x280] sm:$0xff]  ;;  %v2303_v17 = vpack.c.bf16 %v205_v10, %v201_v9  ;;  %v2317_v57 = vpack.c.bf16 %v112_v49, %v108_v48  ;;  %v111_v59 = vld [vmem:[#allocation6 + $0x30] sm:$0xff] }
  0x79   :  { %v636_v6 = vld [vmem:[#allocation8 + $0x288] sm:$0xff]  ;;  %2298 = vmatprep.subr.bf16.mxu1 %v2297_v60  ;;  %v2301_v8 = vpack.c.bf16 %v206_v0, %v202_v63  ;;  %2416 = vmatpush1.bf16.msra.mxu0 %v2415_v1  ;;  %v639_v16 = vld [vmem:[#allocation8 + $0x2a0] sm:$0xff]  ;;  %v116_v60 = vld [vmem:[#allocation6 + $0x58] sm:$0xff]  ;;  %v2319_v3 = vpack.c.bf16 %v111_v59, %v107_v58 }
  0x7a   :  { %v640_v7 = vld [vmem:[#allocation8 + $0x2a8] sm:$0xff]  ;;  %2418 = vmatprep.subr.bf16.mxu0 %v2417_v2  ;;  %v209_v21 = vld [vmem:[#allocation6 + $0x340] sm:$0xff]  ;;  %v2423_v25 = vpack.c.bf16 %v639_v16, %v635_v15  ;;  %v119_v9 = vld [vmem:[#allocation6 + $0x70] sm:$0xff] }
  0x7b   :  { %v210_v11 = vld [vmem:[#allocation6 + $0x348] sm:$0xff]  ;;  %v2421_v14 = vpack.c.bf16 %v640_v7, %v636_v6  ;;  %v213_v22 = vld [vmem:[#allocation6 + $0x360] sm:$0xff]  ;;  %v3161_v6 = vld [vmem:[#allocation3 + $0x18] sm:$0xff]  ;;  %v2321_v7 = vpack.c.bf16 %v120_v61, %v116_v60 }
  0x7c   :  { %v214_v12 = vld [vmem:[#allocation6 + $0x368] sm:$0xff]  ;;  %2300 = vmatpush1.bf16.msra.mxu1 %v2299_v5  ;;  %v643_v27 = vld [vmem:[#allocation8 + $0x2c0] sm:$0xff]  ;;  %v2307_v29 = vpack.c.bf16 %v213_v22, %v209_v21  ;;  %v124_v10 = vld [vmem:[#allocation6 + $0x98] sm:$0xff] }
  0x7d   :  { %v644_v18 = vld [vmem:[#allocation8 + $0x2c8] sm:$0xff]  ;;  %2302 = vmatprep.subr.bf16.mxu1 %v2301_v8  ;;  %v2305_v20 = vpack.c.bf16 %v214_v12, %v210_v11  ;;  %2420 = vmatpush1.bf16.msra.mxu0 %v2419_v13  ;;  %v647_v28 = vld [vmem:[#allocation8 + $0x2e0] sm:$0xff]  ;;  %v115_v8 = vld [vmem:[#allocation6 + $0x50] sm:$0xff] }
  0x7e   :  { %v648_v19 = vld [vmem:[#allocation8 + $0x2e8] sm:$0xff]  ;;  %2422 = vmatprep.subr.bf16.mxu0 %v2421_v14  ;;  %v217_v33 = vld [vmem:[#allocation6 + $0x380] sm:$0xff]  ;;  %v2427_v37 = vpack.c.bf16 %v647_v28, %v643_v27  ;;  %v128_v11 = vld [vmem:[#allocation6 + $0xb8] sm:$0xff] }
  0x7f   :  { %v218_v23 = vld [vmem:[#allocation6 + $0x388] sm:$0xff]  ;;  %v2425_v26 = vpack.c.bf16 %v648_v19, %v644_v18  ;;  %v221_v34 = vld [vmem:[#allocation6 + $0x3a0] sm:$0xff]  ;;  %v3165_v16 = vld [vmem:[#allocation3 + $0x10] sm:$0xff]  ;;  %v2325_v19 = vpack.c.bf16 %v128_v11, %v124_v10 }
  0x80   :  { %v222_v24 = vld [vmem:[#allocation6 + $0x3a8] sm:$0xff]  ;;  %2304 = vmatpush1.bf16.msra.mxu1 %v2303_v17  ;;  %v651_v40 = vld [vmem:[#allocation8 + $0x300] sm:$0xff]  ;;  %v2311_v42 = vpack.c.bf16 %v221_v34, %v217_v33  ;;  %v2323_v17 = vpack.c.bf16 %v119_v9, %v115_v8  ;;  %v127_v21 = vld [vmem:[#allocation6 + $0xb0] sm:$0xff] }
  0x81   :  { %v652_v30 = vld [vmem:[#allocation8 + $0x308] sm:$0xff]  ;;  %2306 = vmatprep.subr.bf16.mxu1 %v2305_v20  ;;  %v2309_v32 = vpack.c.bf16 %v222_v24, %v218_v23  ;;  %2424 = vmatpush1.bf16.msra.mxu0 %v2423_v25  ;;  %v655_v41 = vld [vmem:[#allocation8 + $0x320] sm:$0xff]  ;;  %v123_v20 = vld [vmem:[#allocation6 + $0x90] sm:$0xff] }
  0x82   :  { %v656_v31 = vld [vmem:[#allocation8 + $0x328] sm:$0xff]  ;;  %2426 = vmatprep.subr.bf16.mxu0 %v2425_v26  ;;  %v225_v46 = vld [vmem:[#allocation6 + $0x3c0] sm:$0xff]  ;;  %v2431_v50 = vpack.c.bf16 %v655_v41, %v651_v40  ;;  %v132_v22 = vld [vmem:[#allocation6 + $0xd8] sm:$0xff]  ;;  %v2327_v26 = vpack.c.bf16 %v127_v21, %v123_v20 }
  0x83   :  { %v226_v35 = vld [vmem:[#allocation6 + $0x3c8] sm:$0xff]  ;;  %v2429_v39 = vpack.c.bf16 %v656_v31, %v652_v30  ;;  %v229_v47 = vld [vmem:[#allocation6 + $0x3e0] sm:$0xff]  ;;  %v136_v23 = vld [vmem:[#allocation6 + $0xf8] sm:$0xff] }
  0x84   :  { %v230_v36 = vld [vmem:[#allocation6 + $0x3e8] sm:$0xff]  ;;  %2308 = vmatpush1.bf16.msra.mxu1 %v2307_v29  ;;  %v659_v52 = vld [vmem:[#allocation8 + $0x340] sm:$0xff]  ;;  %v2315_v54 = vpack.c.bf16 %v229_v47, %v225_v46  ;;  %v3173_v27 = vld [vmem:[#allocation3 + $0x38] sm:$0xff]  ;;  %v2329_v28 = vpack.c.bf16 %v136_v23, %v132_v22 }
  0x85   :  { %v660_v43 = vld [vmem:[#allocation8 + $0x348] sm:$0xff]  ;;  %2310 = vmatprep.subr.bf16.mxu1 %v2309_v32  ;;  %v2313_v45 = vpack.c.bf16 %v230_v36, %v226_v35  ;;  %2428 = vmatpush1.bf16.msra.mxu0 %v2427_v37  ;;  %v663_v53 = vld [vmem:[#allocation8 + $0x360] sm:$0xff]  ;;  %v131_v29 = vld [vmem:[#allocation6 + $0xd0] sm:$0xff] }
  0x86   :  { %v664_v44 = vld [vmem:[#allocation8 + $0x368] sm:$0xff]  ;;  %2430 = vmatprep.subr.bf16.mxu0 %v2429_v39  ;;  %v2435_v62 = vpack.c.bf16 %v663_v53, %v659_v52  ;;  %v667_v0 = vld [vmem:[#allocation8 + $0x380] sm:$0xff]  ;;  %v135_v30 = vld [vmem:[#allocation6 + $0xf0] sm:$0xff] }
  0x87   :  { %v2433_v51 = vpack.c.bf16 %v664_v44, %v660_v43  ;;  %v668_v55 = vld [vmem:[#allocation8 + $0x388] sm:$0xff]  ;;  %v671_v1 = vld [vmem:[#allocation8 + $0x3a0] sm:$0xff]  ;;  %v140_v31 = vld [vmem:[#allocation6 + $0x118] sm:$0xff]  ;;  %v2331_v34 = vpack.c.bf16 %v135_v30, %v131_v29 }
  0x88   :  { %2312 = vmatpush1.bf16.msra.mxu1 %v2311_v42  ;;  %v672_v56 = vld [vmem:[#allocation8 + $0x3a8] sm:$0xff]  ;;  %v3159_v2 = vld [vmem:[#allocation3] sm:$0xff]  ;;  %v2439_v12 = vpack.c.bf16 %v671_v1, %v667_v0  ;;  %v144_v32 = vld [vmem:[#allocation6 + $0x138] sm:$0xff] }
  0x89   :  { %2314 = vmatprep.subr.bf16.mxu1 %v2313_v45  ;;  %2432 = vmatpush1.bf16.msra.mxu0 %v2431_v50  ;;  %v2437_v63 = vpack.c.bf16 %v672_v56, %v668_v55  ;;  %v676_v4 = vld [vmem:[#allocation8 + $0x3c8] sm:$0xff]  ;;  %v675_v14 = vld [vmem:[#allocation8 + $0x3c0] sm:$0xff]  ;;  %v3177_v33 = vld [vmem:[#allocation3 + $0x30] sm:$0xff]  ;;  %v2333_v36 = vpack.c.bf16 %v144_v32, %v140_v31 }
  0x8a   :  { %2434 = vmatprep.subr.bf16.mxu0 %v2433_v51  ;;  %v680_v5 = vld [vmem:[#allocation8 + $0x3e8] sm:$0xff]  ;;  %v679_v15 = vld [vmem:[#allocation8 + $0x3e0] sm:$0xff]  ;;  %v139_v37 = vld [vmem:[#allocation6 + $0x110] sm:$0xff] }
  0x8b   :  { %v2441_v13 = vpack.c.bf16 %v680_v5, %v676_v4  ;;  %v3167_v18 = vld [vmem:[#allocation3 + $0x28] sm:$0xff]  ;;  %v2443_v24 = vpack.c.bf16 %v679_v15, %v675_v14  ;;  %v3171_v25 = vld [vmem:[#allocation3 + $0x20] sm:$0xff]  ;;  %v143_v39 = vld [vmem:[#allocation6 + $0x130] sm:$0xff] }
  0x8c   :  { %2316 = vmatpush1.bf16.msra.mxu1 %v2315_v54  ;;  %v3179_v35 = vld [vmem:[#allocation3 + $0x48] sm:$0xff]  ;;  %v148_v40 = vld [vmem:[#allocation6 + $0x158] sm:$0xff]  ;;  %v3185_v42 = vld [vmem:[#allocation3 + $0x40] sm:$0xff]  ;;  %v2335_v43 = vpack.c.bf16 %v143_v39, %v139_v37 }
  0x8d   :  { %2318 = vmatprep.subr.bf16.mxu1 %v2317_v57  ;;  %2436 = vmatpush1.bf16.msra.mxu0 %v2435_v62  ;;  %v152_v41 = vld [vmem:[#allocation6 + $0x178] sm:$0xff]  ;;  %v147_v46 = vld [vmem:[#allocation6 + $0x150] sm:$0xff]  ;;  %v3195_v52 = vld [vmem:[#allocation3 + $0x68] sm:$0xff] }
  0x8e   :  { %2438 = vmatprep.subr.bf16.mxu0 %v2437_v63  ;;  %v3187_v44 = vld [vmem:[#allocation3 + $0x58] sm:$0xff]  ;;  %v2337_v45 = vpack.c.bf16 %v152_v41, %v148_v40  ;;  %v151_v47 = vld [vmem:[#allocation6 + $0x170] sm:$0xff]  ;;  %v3201_v58 = vld [vmem:[#allocation3 + $0x60] sm:$0xff] }
  0x8f   :  { %298 = vmatmul.mubr.f32.vlgmr.msra.gmra.mrb[0].mxu1 %v3159_v2  ;;  %v156_v48 = vld [vmem:[#allocation6 + $0x198] sm:$0xff]  ;;  %v3193_v50 = vld [vmem:[#allocation3 + $0x50] sm:$0xff]  ;;  %v2339_v51 = vpack.c.bf16 %v151_v47, %v147_v46  ;;  %v3211_v5 = vld [vmem:[#allocation3 + $0x88] sm:$0xff] }
  0x90   :  { %2320 = vmatpush1.bf16.msra.mxu1 %v2319_v3  ;;  %303 = vmatprep.mubr.f32.mxu1 %v3161_v6  ;;  %v160_v49 = vld [vmem:[#allocation6 + $0x1b8] sm:$0xff]  ;;  %v155_v54 = vld [vmem:[#allocation6 + $0x190] sm:$0xff]  ;;  %v3233_v32 = vld [vmem:[#allocation3 + $0xa0] sm:$0xff] }
  0x91   :  { %2322 = vmatprep.subr.bf16.mxu1 %v2321_v7  ;;  %2440 = vmatpush1.bf16.msra.mxu0 %v2439_v12  ;;  %v2341_v53 = vpack.c.bf16 %v160_v49, %v156_v48  ;;  %v159_v55 = vld [vmem:[#allocation6 + $0x1b0] sm:$0xff]  ;;  %v164_v56 = vld [vmem:[#allocation6 + $0x1d8] sm:$0xff]  ;;  %v3217_v12 = vld [vmem:[#allocation3 + $0x80] sm:$0xff] }
  0x92   :  { %2442 = vmatprep.subr.bf16.mxu0 %v2441_v13  ;;  %v168_v57 = vld [vmem:[#allocation6 + $0x1f8] sm:$0xff]  ;;  %v2343_v59 = vpack.c.bf16 %v159_v55, %v155_v54  ;;  %v163_v62 = vld [vmem:[#allocation6 + $0x1d0] sm:$0xff]  ;;  %v3243_v47 = vld [vmem:[#allocation3 + $0xc8] sm:$0xff] }
  0x93   :  { %304 = vmatmul.mubr.f32.gmra.mrb[2].mxu1 %v3165_v16  ;;  %v3203_v60 = vld [vmem:[#allocation3 + $0x78] sm:$0xff]  ;;  %v2345_v61 = vpack.c.bf16 %v168_v57, %v164_v56  ;;  %v167_v63 = vld [vmem:[#allocation6 + $0x1f0] sm:$0xff]  ;;  %v3249_v55 = vld [vmem:[#allocation3 + $0xc0] sm:$0xff] }
  0x94   :  { %2324 = vmatpush1.bf16.msra.mxu1 %v2323_v17  ;;  %309 = vmatprep.mubr.f32.mxu1 %v3167_v18  ;;  %v172_v0 = vld [vmem:[#allocation6 + $0x218] sm:$0xff]  ;;  %v3209_v3 = vld [vmem:[#allocation3 + $0x70] sm:$0xff]  ;;  %v2347_v4 = vpack.c.bf16 %v167_v63, %v163_v62 }
  0x95   :  { %2326 = vmatprep.subr.bf16.mxu1 %v2325_v19  ;;  %2444 = vmatpush1.bf16.msra.mxu0 %v2443_v24  ;;  %v176_v1 = vld [vmem:[#allocation6 + $0x238] sm:$0xff]  ;;  %v171_v8 = vld [vmem:[#allocation6 + $0x210] sm:$0xff]  ;;  %v3227_v24 = vld [vmem:[#allocation3 + $0xa8] sm:$0xff] }
  0x96   :  { %v2349_v7 = vpack.c.bf16 %v176_v1, %v172_v0  ;;  %v175_v9 = vld [vmem:[#allocation6 + $0x230] sm:$0xff]  ;;  %v180_v10 = vld [vmem:[#allocation6 + $0x258] sm:$0xff] }
  0x97   :  { %310 = vmatmul.mubr.f32.gmra.mrb[4].mxu1 %v3171_v25  ;;  %v184_v11 = vld [vmem:[#allocation6 + $0x278] sm:$0xff]  ;;  %v2351_v13 = vpack.c.bf16 %v175_v9, %v171_v8  ;;  %v179_v17 = vld [vmem:[#allocation6 + $0x250] sm:$0xff]  ;;  %v1518_v9 = vld [vmem:[#allocation9 + $0x8] sm:$0xff] }
  0x98   :  { %2328 = vmatpush1.bf16.msra.mxu1 %v2327_v26  ;;  %315 = vmatprep.mubr.f32.mxu1 %v3173_v27  ;;  %v3219_v14 = vld [vmem:[#allocation3 + $0x98] sm:$0xff]  ;;  %v2353_v15 = vpack.c.bf16 %v184_v11, %v180_v10  ;;  %v183_v19 = vld [vmem:[#allocation6 + $0x270] sm:$0xff] }
  0x99   :  { %2330 = vmatprep.subr.bf16.mxu1 %v2329_v28  ;;  %748 = vmatmul.mubr.f32.vlgmr.msra.gmra.mrb[0].mxu0 %v3159_v2  ;;  %v188_v20 = vld [vmem:[#allocation6 + $0x298] sm:$0xff]  ;;  %v3225_v22 = vld [vmem:[#allocation3 + $0x90] sm:$0xff]  ;;  %v2355_v23 = vpack.c.bf16 %v183_v19, %v179_v17  ;;  %v1517_v17 = vld [vmem:[#allocation9] sm:$0xff] }
  0x9a   :  { %753 = vmatprep.mubr.f32.mxu0 %v3161_v6  ;;  %v192_v21 = vld [vmem:[#allocation6 + $0x2b8] sm:$0xff]  ;;  %v187_v28 = vld [vmem:[#allocation6 + $0x290] sm:$0xff] }
  0x9b   :  { %316 = vmatmul.mubr.f32.gmra.mrb[6].mxu1 %v3177_v33  ;;  %v2357_v26 = vpack.c.bf16 %v192_v21, %v188_v20  ;;  %v191_v29 = vld [vmem:[#allocation6 + $0x2b0] sm:$0xff]  ;;  %v196_v30 = vld [vmem:[#allocation6 + $0x2d8] sm:$0xff] }
  0x9c   :  { %2332 = vmatpush1.bf16.msra.mxu1 %v2331_v34  ;;  %321 = vmatprep.mubr.f32.mxu1 %v3179_v35  ;;  %v200_v31 = vld [vmem:[#allocation6 + $0x2f8] sm:$0xff]  ;;  %v2359_v34 = vpack.c.bf16 %v191_v29, %v187_v28  ;;  %v195_v39 = vld [vmem:[#allocation6 + $0x2d0] sm:$0xff] }
  0x9d   :  { %2334 = vmatprep.subr.bf16.mxu1 %v2333_v36  ;;  %754 = vmatmul.mubr.f32.gmra.mrb[2].mxu0 %v3165_v16  ;;  %v3235_v36 = vld [vmem:[#allocation3 + $0xb8] sm:$0xff]  ;;  %v2361_v37 = vpack.c.bf16 %v200_v31, %v196_v30  ;;  %v199_v40 = vld [vmem:[#allocation6 + $0x2f0] sm:$0xff]  ;;  %v1522_v31 = vld [vmem:[#allocation9 + $0x28] sm:$0xff] }
  0x9e   :  { %759 = vmatprep.mubr.f32.mxu0 %v3167_v18  ;;  %v204_v41 = vld [vmem:[#allocation6 + $0x318] sm:$0xff]  ;;  %v2363_v46 = vpack.c.bf16 %v199_v40, %v195_v39  ;;  %v203_v49 = vld [vmem:[#allocation6 + $0x310] sm:$0xff] }
  0x9f   :  { %322 = vmatmul.mubr.f32.gmra.mrb[8].mxu1 %v3185_v42  ;;  %v216_v54 = vld [vmem:[#allocation6 + $0x378] sm:$0xff]  ;;  %v215_v62 = vld [vmem:[#allocation6 + $0x370] sm:$0xff] }
  0xa0   :  { %2336 = vmatpush1.bf16.msra.mxu1 %v2335_v43  ;;  %327 = vmatprep.mubr.f32.mxu1 %v3187_v44  ;;  %v208_v43 = vld [vmem:[#allocation6 + $0x338] sm:$0xff]  ;;  %v3256_v1 = vld [vmem:[#allocation3 + $0xd0] sm:$0xff] }
  0xa1   :  { %2338 = vmatprep.subr.bf16.mxu1 %v2337_v45  ;;  %760 = vmatmul.mubr.f32.gmra.mrb[4].mxu0 %v3171_v25  ;;  %v3241_v45 = vld [vmem:[#allocation3 + $0xb0] sm:$0xff]  ;;  %v2365_v48 = vpack.c.bf16 %v208_v43, %v204_v41  ;;  %v3251_v57 = vld [vmem:[#allocation3 + $0xd8] sm:$0xff]  ;;  %v1521_v41 = vld [vmem:[#allocation9 + $0x20] sm:$0xff] }
  0xa2   :  { %765 = vmatprep.mubr.f32.mxu0 %v3173_v27  ;;  %v220_v63 = vld [vmem:[#allocation6 + $0x398] sm:$0xff]  ;;  %v219_v8 = vld [vmem:[#allocation6 + $0x390] sm:$0xff] }
  0xa3   :  { %328 = vmatmul.mubr.f32.gmra.mrb[10].mxu1 %v3193_v50  ;;  %v224_v0 = vld [vmem:[#allocation6 + $0x3b8] sm:$0xff]  ;;  %v1519_v19 = vld [vmem:[#allocation9 + $0x10] sm:$0xff] }
  0xa4   :  { %2340 = vmatpush1.bf16.msra.mxu1 %v2339_v51  ;;  %333 = vmatprep.mubr.f32.mxu1 %v3195_v52  ;;  %v207_v51 = vld [vmem:[#allocation6 + $0x330] sm:$0xff]  ;;  %v1520_v10 = vld [vmem:[#allocation9 + $0x18] sm:$0xff]  ;;  %v2373_v11 = vpack.c.bf16 %v224_v0, %v220_v63  ;;  %v1525_v0 = vld [vmem:[#allocation9 + $0x40] sm:$0xff] }
  0xa5   :  { %2342 = vmatprep.subr.bf16.mxu1 %v2341_v53  ;;  %766 = vmatmul.mubr.f32.gmra.mrb[6].mxu0 %v3177_v33  ;;  %v212_v53 = vld [vmem:[#allocation6 + $0x358] sm:$0xff]  ;;  %v2367_v56 = vpack.c.bf16 %v207_v51, %v203_v49  ;;  %v227_v30 = vld [vmem:[#allocation6 + $0x3d0] sm:$0xff] }
  0xa6   :  { %771 = vmatprep.mubr.f32.mxu0 %v3179_v35  ;;  %v228_v20 = vld [vmem:[#allocation6 + $0x3d8] sm:$0xff]  ;;  %v231_v39 = vld [vmem:[#allocation6 + $0x3f0] sm:$0xff] }
  0xa7   :  { %334 = vmatmul.mubr.f32.gmra.mrb[12].mxu1 %v3201_v58  ;;  %v232_v21 = vld [vmem:[#allocation6 + $0x3f8] sm:$0xff]  ;;  %v1523_v43 = vld [vmem:[#allocation9 + $0x30] sm:$0xff] }
  0xa8   :  { %2344 = vmatpush1.bf16.msra.mxu1 %v2343_v59  ;;  %339 = vmatprep.mubr.f32.mxu1 %v3203_v60  ;;  %v2369_v59 = vpack.c.bf16 %v216_v54, %v212_v53  ;;  %v3266_v28 = vld [vmem:[#allocation3 + $0xf8] sm:$0xff]  ;;  %v2515_v49 = vpack.c.bf16 %v1523_v43, %v1521_v41  ;;  %v3272_v51 = vld [vmem:[#allocation3 + $0xf0] sm:$0xff]  ;;  %v2379_v53 = vpack.c.bf16 %v231_v39, %v227_v30 }
  0xa9   :  { %2346 = vmatprep.subr.bf16.mxu1 %v2345_v61  ;;  %772 = vmatmul.mubr.f32.gmra.mrb[8].mxu0 %v3185_v42  ;;  %v211_v61 = vld [vmem:[#allocation6 + $0x350] sm:$0xff] }
  0xaa   :  { %777 = vmatprep.mubr.f32.mxu0 %v3187_v44  ;;  %v557_v54 = vld [vmem:[#allocation8 + $0x10] sm:$0xff] }
  0xab   :  { %340 = vmatmul.mubr.f32.gmra.mrb[14].mxu1 %v3209_v3  ;;  %v565_v30 = vld [vmem:[#allocation8 + $0x50] sm:$0xff] }
  0xac   :  { %2348 = vmatpush1.bf16.msra.mxu1 %v2347_v4  ;;  %345 = vmatprep.mubr.f32.mxu1 %v3211_v5  ;;  %v3258_v4 = vld [vmem:[#allocation3 + $0xe8] sm:$0xff]  ;;  %v1535_v41 = vld [vmem:[#allocation9 + $0x90] sm:$0xff] }
  0xad   :  { %2350 = vmatprep.subr.bf16.mxu1 %v2349_v7  ;;  %778 = vmatmul.mubr.f32.gmra.mrb[10].mxu0 %v3193_v50  ;;  %v2371_v7 = vpack.c.bf16 %v215_v62, %v211_v61  ;;  %v561_v62 = vld [vmem:[#allocation8 + $0x30] sm:$0xff] }
  0xae   :  { %783 = vmatprep.mubr.f32.mxu0 %v3195_v52 }
  0xaf   :  { %346 = vmatmul.mubr.f32.gmra.mrb[16].mxu1 %v3217_v12 }
  0xb0   :  { %2352 = vmatpush1.bf16.msra.mxu1 %v2351_v13  ;;  %351 = vmatprep.mubr.f32.mxu1 %v3219_v14  ;;  %v223_v13 = vld [vmem:[#allocation6 + $0x3b0] sm:$0xff] }
  0xb1   :  { %2354 = vmatprep.subr.bf16.mxu1 %v2353_v15  ;;  %784 = vmatmul.mubr.f32.gmra.mrb[12].mxu0 %v3201_v58  ;;  %v2509_v15 = vpack.c.bf16 %v1520_v10, %v1518_v9  ;;  %v2375_v29 = vpack.c.bf16 %v223_v13, %v219_v8  ;;  %v566_v8 = vld [vmem:[#allocation8 + $0x58] sm:$0xff] }
  0xb2   :  { %789 = vmatprep.mubr.f32.mxu0 %v3203_v60  ;;  %v570_v9 = vld [vmem:[#allocation8 + $0x78] sm:$0xff] }
  0xb3   :  { %352 = vmatmul.mubr.f32.gmra.mrb[18].mxu1 %v3225_v22  ;;  %2510 = vmatprep.subr.bf16.mxu0 %v2509_v15  ;;  %v1532_v13 = vld [vmem:[#allocation9 + $0x78] sm:$0xff]  ;;  %v1529_v15 = vld [vmem:[#allocation9 + $0x60] sm:$0xff] }
  0xb4   :  { %2356 = vmatpush1.bf16.msra.mxu1 %v2355_v23  ;;  %357 = vmatprep.mubr.f32.mxu1 %v3227_v24  ;;  %v2511_v23 = vpack.c.bf16 %v1519_v19, %v1517_v17  ;;  %v2447_v17 = vpack.c.bf16 %v561_v62, %v557_v54  ;;  %v577_v54 = vld [vmem:[#allocation8 + $0xb0] sm:$0xff]  ;;  %v1537_v62 = vld [vmem:[#allocation9 + $0xa0] sm:$0xff] }
  0xb5   :  { %2358 = vmatprep.subr.bf16.mxu1 %v2357_v26  ;;  %790 = vmatmul.mubr.f32.gmra.mrb[14].mxu0 %v3209_v3  ;;  %v3264_v26 = vld [vmem:[#allocation3 + $0xe0] sm:$0xff] }
  0xb6   :  { %795 = vmatprep.mubr.f32.mxu0 %v3211_v5  ;;  %2512 = vmatpush1.bf16.msra.mxu0 %v2511_v23  ;;  %v1536_v23 = vld [vmem:[#allocation9 + $0x98] sm:$0xff] }
  0xb7   :  { %358 = vmatmul.mubr.f32.gmra.mrb[20].mxu1 %v3233_v32 }
  0xb8   :  { %2360 = vmatpush1.bf16.msra.mxu1 %v2359_v34  ;;  %363 = vmatprep.mubr.f32.mxu1 %v3235_v36  ;;  %v1524_v34 = vld [vmem:[#allocation9 + $0x38] sm:$0xff] }
  0xb9   :  { %2362 = vmatprep.subr.bf16.mxu1 %v2361_v37  ;;  %796 = vmatmul.mubr.f32.gmra.mrb[16].mxu0 %v3217_v12  ;;  %v2377_v37 = vpack.c.bf16 %v232_v21, %v228_v20  ;;  %v2513_v40 = vpack.c.bf16 %v1524_v34, %v1522_v31  ;;  %v1531_v20 = vld [vmem:[#allocation9 + $0x70] sm:$0xff]  ;;  %v1534_v21 = vld [vmem:[#allocation9 + $0x88] sm:$0xff]  ;;  %v574_v34 = vld [vmem:[#allocation8 + $0x98] sm:$0xff] }
  0xba   :  { %801 = vmatprep.mubr.f32.mxu0 %v3219_v14  ;;  %v569_v31 = vld [vmem:[#allocation8 + $0x70] sm:$0xff]  ;;  %v2523_v39 = vpack.c.bf16 %v1531_v20, %v1529_v15  ;;  %v594_v15 = vld [vmem:[#allocation8 + $0x138] sm:$0xff]  ;;  %v1541_v20 = vld [vmem:[#allocation9 + $0xc0] sm:$0xff] }
  0xbb   :  { %364 = vmatmul.mubr.f32.gmra.mrb[22].mxu1 %v3241_v45  ;;  %2514 = vmatprep.subr.bf16.mxu0 %v2513_v40  ;;  %v1533_v40 = vld [vmem:[#allocation9 + $0x80] sm:$0xff]  ;;  %v2451_v43 = vpack.c.bf16 %v569_v31, %v565_v30  ;;  %v1548_v30 = vld [vmem:[#allocation9 + $0xf8] sm:$0xff] }
  0xbc   :  { %2364 = vmatpush1.bf16.msra.mxu1 %v2363_v46  ;;  %369 = vmatprep.mubr.f32.mxu1 %v3243_v47  ;;  %v558_v46 = vld [vmem:[#allocation8 + $0x18] sm:$0xff] }
  0xbd   :  { %2366 = vmatprep.subr.bf16.mxu1 %v2365_v48  ;;  %802 = vmatmul.mubr.f32.gmra.mrb[18].mxu0 %v3225_v22  ;;  %v562_v48 = vld [vmem:[#allocation8 + $0x38] sm:$0xff] }
  0xbe   :  { %807 = vmatprep.mubr.f32.mxu0 %v3227_v24  ;;  %v2445_v61 = vpack.c.bf16 %v562_v48, %v558_v46  ;;  %2516 = vmatpush1.bf16.msra.mxu0 %v2515_v49  ;;  %v1538_v46 = vld [vmem:[#allocation9 + $0xa8] sm:$0xff]  ;;  %v1540_v48 = vld [vmem:[#allocation9 + $0xb8] sm:$0xff] }
  0xbf   :  { %370 = vmatmul.mubr.f32.gmra.mrb[24].mxu1 %v3249_v55 }
  0xc0   :  { %2368 = vmatpush1.bf16.msra.mxu1 %v2367_v56  ;;  %375 = vmatprep.mubr.f32.mxu1 %v3251_v57  ;;  %v1526_v56 = vld [vmem:[#allocation9 + $0x48] sm:$0xff] }
  0xc1   :  { %2370 = vmatprep.subr.bf16.mxu1 %v2369_v59  ;;  %808 = vmatmul.mubr.f32.gmra.mrb[20].mxu0 %v3233_v32  ;;  %v1528_v59 = vld [vmem:[#allocation9 + $0x58] sm:$0xff] }
  0xc2   :  { %813 = vmatprep.mubr.f32.mxu0 %v3235_v36  ;;  %v2517_v63 = vpack.c.bf16 %v1528_v59, %v1526_v56  ;;  %v582_v56 = vld [vmem:[#allocation8 + $0xd8] sm:$0xff] }
  0xc3   :  { %376 = vmatmul.mubr.f32.gmra.mrb[26].mxu1 %v3256_v1  ;;  %v586_v59 = vld [vmem:[#allocation8 + $0xf8] sm:$0xff] }
  0xc4   :  { %2372 = vmatpush1.bf16.msra.mxu1 %v2371_v7  ;;  %381 = vmatprep.mubr.f32.mxu1 %v3258_v4  ;;  %v1527_v7 = vld [vmem:[#allocation9 + $0x50] sm:$0xff] }
  0xc5   :  { %2374 = vmatprep.subr.bf16.mxu1 %v2373_v11  ;;  %814 = vmatmul.mubr.f32.gmra.mrb[22].mxu0 %v3241_v45  ;;  %v2519_v10 = vpack.c.bf16 %v1527_v7, %v1525_v0  ;;  %v1530_v11 = vld [vmem:[#allocation9 + $0x68] sm:$0xff] }
  0xc6   :  { %819 = vmatprep.mubr.f32.mxu0 %v3243_v47  ;;  %2518 = vmatprep.subr.bf16.mxu0 %v2517_v63  ;;  %v2521_v19 = vpack.c.bf16 %v1532_v13, %v1530_v11  ;;  %v1539_v63 = vld [vmem:[#allocation9 + $0xb0] sm:$0xff]  ;;  %v1542_v7 = vld [vmem:[#allocation9 + $0xc8] sm:$0xff]  ;;  %v590_v13 = vld [vmem:[#allocation8 + $0x118] sm:$0xff] }
  0xc7   :  { %382 = vmatmul.mubr.f32.gmra.mrb[28].mxu1 %v3264_v26  ;;  %2520 = vmatpush1.bf16.msra.mxu0 %v2519_v10  ;;  %v581_v10 = vld [vmem:[#allocation8 + $0xd0] sm:$0xff]  ;;  %v2461_v31 = vpack.c.bf16 %v594_v15, %v590_v13  ;;  %v614_v13 = vld [vmem:[#allocation8 + $0x1d8] sm:$0xff] }
  0xc8   :  { %2376 = vmatpush1.bf16.msra.mxu1 %v2375_v29  ;;  %387 = vmatprep.mubr.f32.mxu1 %v3266_v28  ;;  %v2449_v29 = vpack.c.bf16 %v570_v9, %v566_v8  ;;  %v1544_v8 = vld [vmem:[#allocation9 + $0xd8] sm:$0xff]  ;;  %v2457_v9 = vpack.c.bf16 %v586_v59, %v582_v56  ;;  %v585_v11 = vld [vmem:[#allocation8 + $0xf0] sm:$0xff] }
  0xc9   :  { %2378 = vmatprep.subr.bf16.mxu1 %v2377_v37  ;;  %820 = vmatmul.mubr.f32.gmra.mrb[24].mxu0 %v3249_v55  ;;  %v578_v37 = vld [vmem:[#allocation8 + $0xb8] sm:$0xff] }
  0xca   :  { %825 = vmatprep.mubr.f32.mxu0 %v3251_v57  ;;  %2522 = vmatprep.subr.bf16.mxu0 %v2521_v19  ;;  %v2453_v49 = vpack.c.bf16 %v578_v37, %v574_v34  ;;  %v2533_v19 = vpack.c.bf16 %v1544_v8, %v1542_v7  ;;  %v589_v34 = vld [vmem:[#allocation8 + $0x110] sm:$0xff]  ;;  %v606_v56 = vld [vmem:[#allocation8 + $0x198] sm:$0xff] }
  0xcb   :  { %388 = vmatmul.mubr.f32.gmra.mrb[30].mxu1 %v3272_v51  ;;  %2524 = vmatpush1.bf16.msra.mxu0 %v2523_v39  ;;  %v593_v37 = vld [vmem:[#allocation8 + $0x130] sm:$0xff]  ;;  %v598_v39 = vld [vmem:[#allocation8 + $0x158] sm:$0xff] }
  0xcc   :  { %2380 = vmatpush1.bf16.msra.mxu1 %v2379_v53  ;;  %458 = vmatprep.mubr.f32.mxu1 %v3155_v38  ;;  %v2525_v38 = vpack.c.bf16 %v1536_v23, %v1534_v21  ;;  %v573_v53 = vld [vmem:[#allocation8 + $0x90] sm:$0xff]  ;;  %v2459_v23 = vpack.c.bf16 %v585_v11, %v581_v10  ;;  %v610_v59 = vld [vmem:[#allocation8 + $0x1b8] sm:$0xff]  ;;  %v1549_v10 = vld [vmem:[#allocation9 + $0x100] sm:$0xff] }
  0xcd   :  { %2446 = vmatprep.subr.bf16.mxu1 %v2445_v61  ;;  %826 = vmatmul.mubr.f32.gmra.mrb[26].mxu0 %v3256_v1  ;;  %v2529_v61 = vpack.c.bf16 %v1540_v48, %v1538_v46  ;;  %v2455_v0 = vpack.c.bf16 %v577_v54, %v573_v53  ;;  %v1543_v21 = vld [vmem:[#allocation9 + $0xd0] sm:$0xff]  ;;  %v2463_v48 = vpack.c.bf16 %v593_v37, %v589_v34  ;;  %v618_v15 = vld [vmem:[#allocation8 + $0x1f8] sm:$0xff]  ;;  %v1553_v34 = vld [vmem:[#allocation9 + $0x120] sm:$0xff] }
  0xce   :  { %831 = vmatprep.mubr.f32.mxu0 %v3258_v4  ;;  %2526 = vmatprep.subr.bf16.mxu0 %v2525_v38  ;;  %v602_v38 = vld [vmem:[#allocation8 + $0x178] sm:$0xff]  ;;  %v1547_v46 = vld [vmem:[#allocation9 + $0xf0] sm:$0xff]  ;;  %v2469_v7 = vpack.c.bf16 %v610_v59, %v606_v56  ;;  %v1557_v56 = vld [vmem:[#allocation9 + $0x140] sm:$0xff] }
  0xcf   :  { %459 = vmatmul.mubr.f32.vlgmr.msra.gmra.mrb[32].mxu1 %v3159_v2  ;;  %v2527_v2 = vpack.c.bf16 %v1535_v41, %v1533_v40  ;;  %v2535_v40 = vpack.c.bf16 %v1543_v21, %v1541_v20  ;;  %v597_v53 = vld [vmem:[#allocation8 + $0x150] sm:$0xff]  ;;  %v1554_v21 = vld [vmem:[#allocation9 + $0x128] sm:$0xff] }
  0xd0   :  { %2448 = vmatpush1.bf16.msra.mxu1 %v2447_v17  ;;  %464 = vmatprep.mubr.f32.mxu1 %v3161_v6  ;;  %v2531_v17 = vpack.c.bf16 %v1539_v63, %v1537_v62  ;;  %v601_v54 = vld [vmem:[#allocation8 + $0x170] sm:$0xff]  ;;  %v1550_v63 = vld [vmem:[#allocation9 + $0x108] sm:$0xff] }
  0xd1   :  { %2450 = vmatprep.subr.bf16.mxu1 %v2449_v29  ;;  %832 = vmatmul.mubr.f32.gmra.mrb[28].mxu0 %v3264_v26  ;;  %v1546_v29 = vld [vmem:[#allocation9 + $0xe8] sm:$0xff]  ;;  %v605_v62 = vld [vmem:[#allocation8 + $0x190] sm:$0xff] }
  0xd2   :  { %837 = vmatprep.mubr.f32.mxu0 %v3266_v28  ;;  %2528 = vmatpush1.bf16.msra.mxu0 %v2527_v2  ;;  %v2537_v41 = vpack.c.bf16 %v1548_v30, %v1546_v29  ;;  %v609_v8 = vld [vmem:[#allocation8 + $0x1b0] sm:$0xff]  ;;  %v2473_v29 = vpack.c.bf16 %v618_v15, %v614_v13  ;;  %v1564_v13 = vld [vmem:[#allocation9 + $0x178] sm:$0xff] }
  0xd3   :  { %465 = vmatmul.mubr.f32.gmra.mrb[34].mxu1 %v3165_v16  ;;  %2530 = vmatprep.subr.bf16.mxu0 %v2529_v61  ;;  %v2467_v61 = vpack.c.bf16 %v601_v54, %v597_v53  ;;  %v1551_v11 = vld [vmem:[#allocation9 + $0x110] sm:$0xff] }
  0xd4   :  { %2452 = vmatpush1.bf16.msra.mxu1 %v2451_v43  ;;  %470 = vmatprep.mubr.f32.mxu1 %v3167_v18  ;;  %v1545_v43 = vld [vmem:[#allocation9 + $0xe0] sm:$0xff]  ;;  %v613_v20 = vld [vmem:[#allocation8 + $0x1d0] sm:$0xff] }
  0xd5   :  { %2454 = vmatprep.subr.bf16.mxu1 %v2453_v49  ;;  %838 = vmatmul.mubr.f32.gmra.mrb[30].mxu0 %v3272_v51  ;;  %v2465_v49 = vpack.c.bf16 %v602_v38, %v598_v39  ;;  %v2539_v2 = vpack.c.bf16 %v1547_v46, %v1545_v43  ;;  %v617_v30 = vld [vmem:[#allocation8 + $0x1f0] sm:$0xff]  ;;  %v622_v39 = vld [vmem:[#allocation8 + $0x218] sm:$0xff]  ;;  %v1558_v46 = vld [vmem:[#allocation9 + $0x148] sm:$0xff] }
  0xd6   :  { %2532 = vmatpush1.bf16.msra.mxu0 %v2531_v17  ;;  %v2543_v17 = vpack.c.bf16 %v1551_v11, %v1549_v10  ;;  %v1555_v37 = vld [vmem:[#allocation9 + $0x130] sm:$0xff]  ;;  %v626_v38 = vld [vmem:[#allocation8 + $0x238] sm:$0xff]  ;;  %v1562_v11 = vld [vmem:[#allocation9 + $0x168] sm:$0xff] }
  0xd7   :  { %471 = vmatmul.mubr.f32.gmra.mrb[36].mxu1 %v3171_v25  ;;  %2534 = vmatprep.subr.bf16.mxu0 %v2533_v19  ;;  %v2471_v19 = vpack.c.bf16 %v609_v8, %v605_v62  ;;  %v621_v43 = vld [vmem:[#allocation8 + $0x210] sm:$0xff]  ;;  %v642_v10 = vld [vmem:[#allocation8 + $0x2b8] sm:$0xff]  ;;  %v2553_v15 = vpack.c.bf16 %v1564_v13, %v1562_v11 }
  0xd8   :  { %2456 = vmatpush1.bf16.msra.mxu1 %v2455_v0  ;;  %476 = vmatprep.mubr.f32.mxu1 %v3173_v27  ;;  %v1552_v0 = vld [vmem:[#allocation9 + $0x118] sm:$0xff]  ;;  %v625_v53 = vld [vmem:[#allocation8 + $0x230] sm:$0xff] }
  0xd9   :  { %2458 = vmatprep.subr.bf16.mxu1 %v2457_v9  ;;  %v2541_v9 = vpack.c.bf16 %v1552_v0, %v1550_v63  ;;  %v1559_v59 = vld [vmem:[#allocation9 + $0x150] sm:$0xff]  ;;  %v2479_v63 = vpack.c.bf16 %v625_v53, %v621_v43  ;;  %v662_v11 = vld [vmem:[#allocation8 + $0x358] sm:$0xff] }
  0xda   :  { %2536 = vmatpush1.bf16.msra.mxu0 %v2535_v40  ;;  %v2547_v40 = vpack.c.bf16 %v1555_v37, %v1553_v34  ;;  %v2551_v62 = vpack.c.bf16 %v1559_v59, %v1557_v56  ;;  %v633_v8 = vld [vmem:[#allocation8 + $0x270] sm:$0xff]  ;;  %v650_v34 = vld [vmem:[#allocation8 + $0x2f8] sm:$0xff]  ;;  %v1566_v37 = vld [vmem:[#allocation9 + $0x188] sm:$0xff] }
  0xdb   :  { %477 = vmatmul.mubr.f32.gmra.mrb[38].mxu1 %v3177_v33  ;;  %2538 = vmatprep.subr.bf16.mxu0 %v2537_v41  ;;  %v2475_v41 = vpack.c.bf16 %v617_v30, %v613_v20  ;;  %v641_v30 = vld [vmem:[#allocation8 + $0x2b0] sm:$0xff]  ;;  %v658_v56 = vld [vmem:[#allocation8 + $0x338] sm:$0xff]  ;;  %v1570_v59 = vld [vmem:[#allocation9 + $0x1a8] sm:$0xff] }
  0xdc   :  { %2460 = vmatpush1.bf16.msra.mxu1 %v2459_v23  ;;  %482 = vmatprep.mubr.f32.mxu1 %v3179_v35  ;;  %v1556_v23 = vld [vmem:[#allocation9 + $0x138] sm:$0xff]  ;;  %v649_v53 = vld [vmem:[#allocation8 + $0x2f0] sm:$0xff] }
  0xdd   :  { %2462 = vmatprep.subr.bf16.mxu1 %v2461_v31  ;;  %v2545_v31 = vpack.c.bf16 %v1556_v23, %v1554_v21  ;;  %v666_v13 = vld [vmem:[#allocation8 + $0x378] sm:$0xff] }
  0xde   :  { %2540 = vmatpush1.bf16.msra.mxu0 %v2539_v2  ;;  %v630_v2 = vld [vmem:[#allocation8 + $0x258] sm:$0xff] }
  0xdf   :  { %483 = vmatmul.mubr.f32.gmra.mrb[40].mxu1 %v3185_v42  ;;  %2542 = vmatprep.subr.bf16.mxu0 %v2541_v9  ;;  %v638_v9 = vld [vmem:[#allocation8 + $0x298] sm:$0xff] }
  0xe0   :  { %2464 = vmatpush1.bf16.msra.mxu1 %v2463_v48  ;;  %488 = vmatprep.mubr.f32.mxu1 %v3187_v44  ;;  %v1560_v48 = vld [vmem:[#allocation9 + $0x158] sm:$0xff]  ;;  %v2485_v23 = vpack.c.bf16 %v642_v10, %v638_v9  ;;  %v653_v9 = vld [vmem:[#allocation8 + $0x310] sm:$0xff] }
  0xe1   :  { %2466 = vmatprep.subr.bf16.mxu1 %v2465_v49  ;;  %v2477_v49 = vpack.c.bf16 %v626_v38, %v622_v39  ;;  %v2549_v54 = vpack.c.bf16 %v1560_v48, %v1558_v46  ;;  %v1568_v39 = vld [vmem:[#allocation9 + $0x198] sm:$0xff]  ;;  %v657_v10 = vld [vmem:[#allocation8 + $0x330] sm:$0xff] }
  0xe2   :  { %2544 = vmatpush1.bf16.msra.mxu0 %v2543_v17  ;;  %v1561_v17 = vld [vmem:[#allocation9 + $0x160] sm:$0xff]  ;;  %v2557_v38 = vpack.c.bf16 %v1568_v39, %v1566_v37  ;;  %v670_v37 = vld [vmem:[#allocation8 + $0x398] sm:$0xff] }
  0xe3   :  { %489 = vmatmul.mubr.f32.gmra.mrb[42].mxu1 %v3193_v50  ;;  %2546 = vmatprep.subr.bf16.mxu0 %v2545_v31  ;;  %v646_v31 = vld [vmem:[#allocation8 + $0x2d8] sm:$0xff] }
  0xe4   :  { %2468 = vmatpush1.bf16.msra.mxu1 %v2467_v61  ;;  %494 = vmatprep.mubr.f32.mxu1 %v3195_v52  ;;  %v634_v61 = vld [vmem:[#allocation8 + $0x278] sm:$0xff]  ;;  %v2489_v48 = vpack.c.bf16 %v650_v34, %v646_v31  ;;  %v661_v31 = vld [vmem:[#allocation8 + $0x350] sm:$0xff] }
  0xe5   :  { %2470 = vmatprep.subr.bf16.mxu1 %v2469_v7  ;;  %v2481_v0 = vpack.c.bf16 %v634_v61, %v630_v2  ;;  %v629_v7 = vld [vmem:[#allocation8 + $0x250] sm:$0xff]  ;;  %v1572_v2 = vld [vmem:[#allocation9 + $0x1b8] sm:$0xff] }
  0xe6   :  { %2548 = vmatpush1.bf16.msra.mxu0 %v2547_v40  ;;  %v2483_v20 = vpack.c.bf16 %v633_v8, %v629_v7  ;;  %v1565_v40 = vld [vmem:[#allocation9 + $0x180] sm:$0xff]  ;;  %v2561_v61 = vpack.c.bf16 %v1572_v2, %v1570_v59  ;;  %v665_v34 = vld [vmem:[#allocation8 + $0x370] sm:$0xff]  ;;  %v674_v39 = vld [vmem:[#allocation8 + $0x3b8] sm:$0xff] }
  0xe7   :  { %495 = vmatmul.mubr.f32.gmra.mrb[44].mxu1 %v3201_v58  ;;  %2550 = vmatprep.subr.bf16.mxu0 %v2549_v54  ;;  %v654_v54 = vld [vmem:[#allocation8 + $0x318] sm:$0xff] }
  0xe8   :  { %2472 = vmatpush1.bf16.msra.mxu1 %v2471_v19  ;;  %500 = vmatprep.mubr.f32.mxu1 %v3203_v60  ;;  %v1563_v19 = vld [vmem:[#allocation9 + $0x170] sm:$0xff]  ;;  %v2493_v8 = vpack.c.bf16 %v658_v56, %v654_v54  ;;  %v678_v59 = vld [vmem:[#allocation8 + $0x3d8] sm:$0xff] }
  0xe9   :  { %2474 = vmatprep.subr.bf16.mxu1 %v2473_v29  ;;  %v2555_v21 = vpack.c.bf16 %v1563_v19, %v1561_v17  ;;  %v637_v29 = vld [vmem:[#allocation8 + $0x290] sm:$0xff]  ;;  %v1576_v17 = vld [vmem:[#allocation9 + $0x1d8] sm:$0xff] }
  0xea   :  { %2552 = vmatpush1.bf16.msra.mxu0 %v2551_v62  ;;  %v2487_v43 = vpack.c.bf16 %v641_v30, %v637_v29  ;;  %v1569_v62 = vld [vmem:[#allocation9 + $0x1a0] sm:$0xff]  ;;  %v2497_v30 = vpack.c.bf16 %v666_v13, %v662_v11  ;;  %v669_v54 = vld [vmem:[#allocation8 + $0x390] sm:$0xff]  ;;  %v682_v2 = vld [vmem:[#allocation8 + $0x3f8] sm:$0xff] }
  0xeb   :  { %501 = vmatmul.mubr.f32.gmra.mrb[46].mxu1 %v3209_v3  ;;  %2554 = vmatprep.subr.bf16.mxu0 %v2553_v15  ;;  %v1574_v15 = vld [vmem:[#allocation9 + $0x1c8] sm:$0xff]  ;;  %v673_v56 = vld [vmem:[#allocation8 + $0x3b0] sm:$0xff] }
  0xec   :  { %2476 = vmatpush1.bf16.msra.mxu1 %v2475_v41  ;;  %506 = vmatprep.mubr.f32.mxu1 %v3211_v5  ;;  %v1567_v41 = vld [vmem:[#allocation9 + $0x190] sm:$0xff]  ;;  %v2565_v19 = vpack.c.bf16 %v1576_v17, %v1574_v15 }
  0xed   :  { %2478 = vmatprep.subr.bf16.mxu1 %v2477_v49  ;;  %v2559_v46 = vpack.c.bf16 %v1567_v41, %v1565_v40  ;;  %v645_v49 = vld [vmem:[#allocation8 + $0x2d0] sm:$0xff]  ;;  %v1580_v40 = vld [vmem:[#allocation9 + $0x1f8] sm:$0xff] }
  0xee   :  { %2556 = vmatpush1.bf16.msra.mxu0 %v2555_v21  ;;  %v1575_v21 = vld [vmem:[#allocation9 + $0x1d0] sm:$0xff] }
  0xef   :  { %507 = vmatmul.mubr.f32.gmra.mrb[48].mxu1 %v3217_v12  ;;  %2558 = vmatprep.subr.bf16.mxu0 %v2557_v38  ;;  %v1578_v38 = vld [vmem:[#allocation9 + $0x1e8] sm:$0xff] }
  0xf0   :  { %2480 = vmatpush1.bf16.msra.mxu1 %v2479_v63  ;;  %512 = vmatprep.mubr.f32.mxu1 %v3219_v14  ;;  %v1571_v63 = vld [vmem:[#allocation9 + $0x1b0] sm:$0xff]  ;;  %v2569_v41 = vpack.c.bf16 %v1580_v40, %v1578_v38 }
  0xf1   :  { %2482 = vmatprep.subr.bf16.mxu1 %v2481_v0  ;;  %v2491_v0 = vpack.c.bf16 %v649_v53, %v645_v49  ;;  %v2563_v7 = vpack.c.bf16 %v1571_v63, %v1569_v62  ;;  %v2501_v53 = vpack.c.bf16 %v674_v39, %v670_v37  ;;  %v2505_v62 = vpack.c.bf16 %v682_v2, %v678_v59  ;;  %v677_v63 = vld [vmem:[#allocation8 + $0x3d0] sm:$0xff] }
  0xf2   :  { %2560 = vmatpush1.bf16.msra.mxu0 %v2559_v46  ;;  %v1579_v46 = vld [vmem:[#allocation9 + $0x1f0] sm:$0xff] }
  0xf3   :  { %513 = vmatmul.mubr.f32.gmra.mrb[50].mxu1 %v3225_v22  ;;  %2562 = vmatprep.subr.bf16.mxu0 %v2561_v61  ;;  %v2503_v61 = vpack.c.bf16 %v673_v56, %v669_v54 }
  0xf4   :  { %2484 = vmatpush1.bf16.msra.mxu1 %v2483_v20  ;;  %518 = vmatprep.mubr.f32.mxu1 %v3227_v24  ;;  %v1573_v20 = vld [vmem:[#allocation9 + $0x1c0] sm:$0xff] }
  0xf5   :  { %2486 = vmatprep.subr.bf16.mxu1 %v2485_v23  ;;  %v2495_v23 = vpack.c.bf16 %v657_v10, %v653_v9  ;;  %v2567_v29 = vpack.c.bf16 %v1575_v21, %v1573_v20  ;;  %v2935_v9 = vld [vmem:[#allocation3] sm:$0xff] }
  0xf6   :  { %2564 = vmatpush1.bf16.msra.mxu0 %v2563_v7 }
  0xf7   :  { %519 = vmatmul.mubr.f32.gmra.mrb[52].mxu1 %v3233_v32  ;;  %2566 = vmatprep.subr.bf16.mxu0 %v2565_v19 }
  0xf8   :  { %2488 = vmatpush1.bf16.msra.mxu1 %v2487_v43  ;;  %524 = vmatprep.mubr.f32.mxu1 %v3235_v36  ;;  %v1577_v43 = vld [vmem:[#allocation9 + $0x1e0] sm:$0xff] }
  0xf9   :  { %2490 = vmatprep.subr.bf16.mxu1 %v2489_v48  ;;  %v2499_v48 = vpack.c.bf16 %v665_v34, %v661_v31  ;;  %v2571_v49 = vpack.c.bf16 %v1579_v46, %v1577_v43 }
  0xfa   :  { %2568 = vmatpush1.bf16.msra.mxu0 %v2567_v29 }
  0xfb   :  { %525 = vmatmul.mubr.f32.gmra.mrb[54].mxu1 %v3241_v45  ;;  %2570 = vmatprep.subr.bf16.mxu0 %v2569_v41 }
  0xfc   :  { %2492 = vmatpush1.bf16.msra.mxu1 %v2491_v0  ;;  %530 = vmatprep.mubr.f32.mxu1 %v3243_v47  ;;  %v681_v0 = vld [vmem:[#allocation8 + $0x3f0] sm:$0xff] }
  0xfd   :  { %2494 = vmatprep.subr.bf16.mxu1 %v2493_v8  ;;  %v2507_v7 = vpack.c.bf16 %v681_v0, %v677_v63  ;;  %v2934_v8 = vld [vmem:[#allocation3 + $0x8] sm:$0xff]  ;;  %v1583_v63 = vld [vmem:[#allocation9 + $0x210] sm:$0xff] }
  0xfe   :  { %2572 = vmatpush1.bf16.msra.mxu0 %v2571_v49 }
  0xff   :  { %531 = vmatmul.mubr.f32.gmra.mrb[56].mxu1 %v3249_v55 }
 0x100   :  { %2496 = vmatpush1.bf16.msra.mxu1 %v2495_v23  ;;  %536 = vmatprep.mubr.f32.mxu1 %v3251_v57 }
 0x101   :  { %2498 = vmatprep.subr.bf16.mxu1 %v2497_v30 }
 0x103   :  { %537 = vmatmul.mubr.f32.gmra.mrb[58].mxu1 %v3256_v1 }
 0x104   :  { %2500 = vmatpush1.bf16.msra.mxu1 %v2499_v48  ;;  %542 = vmatprep.mubr.f32.mxu1 %v3258_v4 }
 0x105   :  { %2502 = vmatprep.subr.bf16.mxu1 %v2501_v53 }
 0x107   :  { %543 = vmatmul.mubr.f32.gmra.mrb[60].mxu1 %v3264_v26 }
 0x108   :  { %2504 = vmatpush1.bf16.msra.mxu1 %v2503_v61  ;;  %548 = vmatprep.mubr.f32.mxu1 %v3266_v28 }
 0x109   :  { %2506 = vmatprep.subr.bf16.mxu1 %v2505_v62  ;;  %v1581_v62 = vld [vmem:[#allocation9 + $0x200] sm:$0xff] }
 0x10b   :  { %549 = vmatmul.mubr.f32.gmra.mrb[62].mxu1 %v3272_v51 }
 0x10c   :  { %2508 = vmatpush1.bf16.msra.mxu1 %v2507_v7  ;;  %908 = vmatprep.mubr.f32.mxu1 %v2934_v8 }
 0x10f   :  { %909 = vmatmul.mubr.f32.vlgmr.msra.gmra.mrb[64].mxu1 %v2935_v9  ;;  %v1586_v9 = vld [vmem:[#allocation9 + $0x228] sm:$0xff] }
 0x110   :  { %914 = vmatprep.mubr.f32.mxu1 %v3161_v6  ;;  %v1582_v6 = vld [vmem:[#allocation9 + $0x208] sm:$0xff] }
 0x113   :  { %915 = vmatmul.mubr.f32.gmra.mrb[66].mxu1 %v3165_v16  ;;  %v1584_v16 = vld [vmem:[#allocation9 + $0x218] sm:$0xff] }
 0x114   :  { %920 = vmatprep.mubr.f32.mxu1 %v3167_v18  ;;  %v2573_v18 = vpack.c.bf16 %v1584_v16, %v1582_v6  ;;  %v1588_v6 = vld [vmem:[#allocation9 + $0x238] sm:$0xff] }
 0x116   :  { %2574 = vmatprep.subr.bf16.mxu0 %v2573_v18 }
 0x117   :  { %921 = vmatmul.mubr.f32.gmra.mrb[68].mxu1 %v3171_v25 }
 0x118   :  { %926 = vmatprep.mubr.f32.mxu1 %v3173_v27 }
 0x11b   :  { %927 = vmatmul.mubr.f32.gmra.mrb[70].mxu1 %v3177_v33 }
 0x11c   :  { %932 = vmatprep.mubr.f32.mxu1 %v3179_v35 }
 0x11f   :  { %933 = vmatmul.mubr.f32.gmra.mrb[72].mxu1 %v3185_v42 }
 0x120   :  { %938 = vmatprep.mubr.f32.mxu1 %v3187_v44 }
 0x123   :  { %939 = vmatmul.mubr.f32.gmra.mrb[74].mxu1 %v3193_v50 }
 0x124   :  { %944 = vmatprep.mubr.f32.mxu1 %v3195_v52 }
 0x127   :  { %945 = vmatmul.mubr.f32.gmra.mrb[76].mxu1 %v3201_v58 }
 0x128   :  { %950 = vmatprep.mubr.f32.mxu1 %v3203_v60 }
 0x12b   :  { %951 = vmatmul.mubr.f32.gmra.mrb[78].mxu1 %v3209_v3 }
 0x12c   :  { %956 = vmatprep.mubr.f32.mxu1 %v3211_v5 }
 0x12f   :  { %957 = vmatmul.mubr.f32.gmra.mrb[80].mxu1 %v3217_v12 }
 0x130   :  { %962 = vmatprep.mubr.f32.mxu1 %v3219_v14 }
 0x133   :  { %963 = vmatmul.mubr.f32.gmra.mrb[82].mxu1 %v3225_v22 }
 0x134   :  { %968 = vmatprep.mubr.f32.mxu1 %v3227_v24 }
 0x137   :  { %969 = vmatmul.mubr.f32.gmra.mrb[84].mxu1 %v3233_v32 }
 0x138   :  { %974 = vmatprep.mubr.f32.mxu1 %v3235_v36 }
 0x13b   :  { %975 = vmatmul.mubr.f32.gmra.mrb[86].mxu1 %v3241_v45 }
 0x13c   :  { %980 = vmatprep.mubr.f32.mxu1 %v3243_v47 }
 0x13f   :  { %981 = vmatmul.mubr.f32.gmra.mrb[88].mxu1 %v3249_v55 }
 0x140   :  { %986 = vmatprep.mubr.f32.mxu1 %v3251_v57 }
 0x143   :  { %987 = vmatmul.mubr.f32.gmra.mrb[90].mxu1 %v3256_v1 }
 0x144   :  { %992 = vmatprep.mubr.f32.mxu1 %v3258_v4 }
 0x147   :  { %993 = vmatmul.mubr.f32.gmra.mrb[92].mxu1 %v3264_v26 }
 0x148   :  { %998 = vmatprep.mubr.f32.mxu1 %v3266_v28 }
 0x14b   :  { %999 = vmatmul.mubr.f32.gmra.mrb[94].mxu1 %v3272_v51 }
 0x162   :  { %v3345_v25 = vpop.f32.mrb[0].mxu1 }
 0x163   :  { %v2189_v27 = vmul.f32 -1.442695, %v3345_v25  ;;  %v3348_v33 = vpop.f32.mrb[1].mxu1 }
 0x164   :  { %v2190_v35 = vmul.f32 -1.442695, %v3348_v33 }
 0x165   :  { %2678 = vpow2.f32 %v2189_v27 }
 0x166   :  { %2680 = vpow2.f32 %v2190_v35  ;;  %v3351_v42 = vpop.f32.mrb[2].mxu1 }
 0x167   :  { %v2193_v44 = vmul.f32 -1.442695, %v3351_v42  ;;  %v3354_v50 = vpop.f32.mrb[3].mxu1 }
 0x168   :  { %v2194_v52 = vmul.f32 -1.442695, %v3354_v50 }
 0x169   :  { %2682 = vpow2.f32 %v2193_v44  ;;  %v1585_v44 = vld [vmem:[#allocation9 + $0x220] sm:$0xff] }
 0x16a   :  { %2684 = vpow2.f32 %v2194_v52  ;;  %v3357_v58 = vpop.f32.mrb[4].mxu1  ;;  %v1587_v52 = vld [vmem:[#allocation9 + $0x230] sm:$0xff] }
 0x16b   :  { %v2197_v60 = vmul.f32 -1.442695, %v3357_v58  ;;  %v3360_v3 = vpop.f32.mrb[5].mxu1 }
 0x16c   :  { %v2198_v5 = vmul.f32 -1.442695, %v3360_v3  ;;  %v3363_v12 = vpop.f32.mrb[0].mxu0 }
 0x16d   :  { %2686 = vpow2.f32 %v2197_v60  ;;  %v3365_v14 = vpop.f32.mrb[1].mxu0 }
 0x16e   :  { %2688 = vpow2.f32 %v2198_v5  ;;  %v3367_v22 = vpop.f32.mrb[6].mxu1 }
 0x16f   :  { %v2679_v24 = vpop.eup %2678  ;;  %v2201_v32 = vmul.f32 -1.442695, %v3367_v22  ;;  %v3370_v36 = vpop.f32.mrb[7].mxu1 }
 0x170   :  { %v2681_v45 = vpop.eup %2680  ;;  %v1197_v47 = vadd.f32 1.0, %v2679_v24  ;;  %v2202_v55 = vmul.f32 -1.442695, %v3370_v36  ;;  %v3373_v57 = vpop.f32.mrb[2].mxu0 }
 0x171   :  { %v1198_v1 = vadd.f32 1.0, %v2681_v45  ;;  %2690 = vpow2.f32 %v2201_v32  ;;  %v3375_v4 = vpop.f32.mrb[3].mxu0  ;;  %v2575_v45 = vpack.c.bf16 %v1583_v63, %v1581_v62 }
 0x172   :  { %2692 = vrcp.f32 %v1197_v47  ;;  %v3377_v26 = vpop.f32.mrb[8].mxu1 }
 0x173   :  { %v2683_v28 = vpop.eup %2682  ;;  %2694 = vrcp.f32 %v1198_v1  ;;  %v2205_v51 = vmul.f32 -1.442695, %v3377_v26  ;;  %v3380_v10 = vpop.f32.mrb[9].mxu1 }
 0x174   :  { %v2685_v11 = vpop.eup %2684  ;;  %v1201_v13 = vadd.f32 1.0, %v2683_v28  ;;  %2696 = vpow2.f32 %v2202_v55  ;;  %v2206_v15 = vmul.f32 -1.442695, %v3380_v10  ;;  %v3383_v17 = vpop.f32.mrb[4].mxu0 }
 0x175   :  { %v1202_v19 = vadd.f32 1.0, %v2685_v11  ;;  %2698 = vpow2.f32 %v2205_v51  ;;  %v3385_v20 = vpop.f32.mrb[5].mxu0 }
 0x176   :  { %2700 = vrcp.f32 %v1201_v13  ;;  %v3387_v21 = vpop.f32.mrb[10].mxu1  ;;  %v2579_v13 = vpack.c.bf16 %v1587_v52, %v1585_v44 }
 0x177   :  { %v2687_v23 = vpop.eup %2686  ;;  %2702 = vrcp.f32 %v1202_v19  ;;  %v2209_v29 = vmul.f32 -1.442695, %v3387_v21  ;;  %v3390_v30 = vpop.f32.mrb[11].mxu1 }
 0x178   :  { %v2689_v31 = vpop.eup %2688  ;;  %v1205_v34 = vadd.f32 1.0, %v2687_v23  ;;  %2704 = vpow2.f32 %v2206_v15  ;;  %v2210_v37 = vmul.f32 -1.442695, %v3390_v30  ;;  %v3393_v39 = vpop.f32.mrb[6].mxu0  ;;  %v1590_v15 = vld [vmem:[#allocation9 + $0x248] sm:$0xff] }
 0x179   :  { %v1206_v38 = vadd.f32 1.0, %v2689_v31  ;;  %2706 = vpow2.f32 %v2209_v29  ;;  %v3395_v40 = vpop.f32.mrb[7].mxu0 }
 0x17a   :  { %2708 = vrcp.f32 %v1205_v34  ;;  %v3397_v41 = vpop.f32.mrb[12].mxu1 }
 0x17b   :  { %v2691_v43 = vpop.eup %2690  ;;  %2710 = vrcp.f32 %v1206_v38  ;;  %v2213_v46 = vmul.f32 -1.442695, %v3397_v41  ;;  %v3400_v48 = vpop.f32.mrb[13].mxu1 }
 0x17c   :  { %v2693_v49 = vpop.eup %2692  ;;  %v1209_v53 = vadd.f32 1.0, %v2691_v43  ;;  %2712 = vpow2.f32 %v2210_v37  ;;  %v2214_v54 = vmul.f32 -1.442695, %v3400_v48  ;;  %v3403_v56 = vpop.f32.mrb[8].mxu0 }
 0x17d   :  { %v2695_v59 = vpop.eup %2694  ;;  %v1389_v2 = vmul.f32 %v2693_v49, %v3345_v25  ;;  %2714 = vpow2.f32 %v2213_v46  ;;  %v3406_v61 = vpop.f32.mrb[9].mxu0 }
 0x17e   :  { %v2697_v0 = vpop.eup %2696  ;;  %v1390_v7 = vmul.f32 %v2695_v59, %v3348_v33  ;;  %2716 = vrcp.f32 %v1209_v53  ;;  %v3409_v8 = vpop.f32.mrb[14].mxu1  ;;  %v1591_v59 = vld [vmem:[#allocation9 + $0x250] sm:$0xff] }
 0x17f   :  { %v2699_v16 = vpop.eup %2698  ;;  %v1210_v18 = vadd.f32 1.0, %v2697_v0  ;;  %2718 = vpow2.f32 %v2214_v54  ;;  %v2217_v27 = vmul.f32 -1.442695, %v3409_v8  ;;  %v1453_v25 = vmul.f32 %v1389_v2, %v3363_v12  ;;  %v3413_v35 = vpop.f32.mrb[15].mxu1  ;;  %v1589_v54 = vld [vmem:[#allocation9 + $0x240] sm:$0xff]  ;;  %v1596_v0 = vld [vmem:[#allocation9 + $0x278] sm:$0xff] }
 0x180   :  { %v2701_v60 = vpop.eup %2700  ;;  %v1213_v5 = vadd.f32 1.0, %v2699_v16  ;;  %v2218_v33 = vmul.f32 -1.442695, %v3413_v35  ;;  %v1454_v24 = vmul.f32 %v1390_v7, %v3365_v14  ;;  %v3417_v32 = vpop.f32.mrb[10].mxu0  ;;  %v2577_v12 = vpack.c.bf16 %v1588_v6, %v1586_v9  ;;  %v1592_v14 = vld [vmem:[#allocation9 + $0x258] sm:$0xff] }
 0x181   :  { %v2703_v47 = vpop.eup %2702  ;;  %v1393_v55 = vmul.f32 %v2701_v60, %v3351_v42  ;;  %2720 = vrcp.f32 %v1210_v18  ;;  %v3420_v1 = vpop.f32.mrb[11].mxu0  ;;  %v2583_v44 = vpack.c.bf16 %v1591_v59, %v1589_v54  ;;  %v1602_v54 = vld [vmem:[#allocation9 + $0x2a8] sm:$0xff]  ;;  %v1604_v59 = vld [vmem:[#allocation9 + $0x2b8] sm:$0xff] }
 0x182   :  { %v2705_v28 = vpop.eup %2704  ;;  %v1394_v51 = vmul.f32 %v2703_v47, %v3354_v50  ;;  %2722 = vrcp.f32 %v1213_v5  ;;  %v3423_v11 = vpop.f32.mrb[16].mxu1  ;;  %1709 = vmatprep.mubr.f32.mxu0 %v1454_v24  ;;  %v1593_v24 = vld [vmem:[#allocation9 + $0x260] sm:$0xff] }
 0x183   :  { %v2707_v19 = vpop.eup %2706  ;;  %v1214_v23 = vadd.f32 1.0, %v2705_v28  ;;  %2724 = vpow2.f32 %v2217_v27  ;;  %v2221_v29 = vmul.f32 -1.442695, %v3423_v11  ;;  %v1457_v42 = vmul.f32 %v1393_v55, %v3373_v57  ;;  %v3427_v31 = vpop.f32.mrb[17].mxu1  ;;  %1710 = vmatmul.mubr.f32.vlgmr.msra.gmra.mrb[32].mxu0 %v1453_v25 }
 0x184   :  { %v2709_v34 = vpop.eup %2708  ;;  %v1217_v37 = vadd.f32 1.0, %v2707_v19  ;;  %2726 = vpow2.f32 %v2218_v33  ;;  %v2222_v50 = vmul.f32 -1.442695, %v3427_v31  ;;  %v1458_v38 = vmul.f32 %v1394_v51, %v3375_v4  ;;  %v3431_v43 = vpop.f32.mrb[12].mxu0  ;;  %2576 = vmatpush1.bf16.msra.mxu0 %v2575_v45  ;;  %v1594_v4 = vld [vmem:[#allocation9 + $0x268] sm:$0xff]  ;;  %v1595_v45 = vld [vmem:[#allocation9 + $0x270] sm:$0xff] }
 0x185   :  { %v2711_v46 = vpop.eup %2710  ;;  %v1397_v49 = vmul.f32 %v2709_v34, %v3357_v58  ;;  %2728 = vrcp.f32 %v1214_v23  ;;  %v3434_v53 = vpop.f32.mrb[13].mxu0  ;;  %2578 = vmatprep.subr.bf16.mxu0 %v2577_v12  ;;  %v2581_v57 = vpack.c.bf16 %v1592_v14, %v1590_v15  ;;  %v1600_v12 = vld [vmem:[#allocation9 + $0x298] sm:$0xff] }
 0x186   :  { %v2713_v2 = vpop.eup %2712  ;;  %v1398_v62 = vmul.f32 %v2711_v46, %v3360_v3  ;;  %2730 = vrcp.f32 %v1217_v37  ;;  %v3437_v63 = vpop.f32.mrb[18].mxu1  ;;  %1715 = vmatprep.mubr.f32.mxu0 %v1458_v38  ;;  %v1599_v38 = vld [vmem:[#allocation9 + $0x290] sm:$0xff] }
 0x187   :  { %v2715_v7 = vpop.eup %2714  ;;  %v1218_v9 = vadd.f32 1.0, %v2713_v2  ;;  %2732 = vpow2.f32 %v2221_v29  ;;  %v2225_v58 = vmul.f32 -1.442695, %v3437_v63  ;;  %v1461_v6 = vmul.f32 %v1397_v49, %v3383_v17  ;;  %v3441_v16 = vpop.f32.mrb[19].mxu1  ;;  %1716 = vmatmul.mubr.f32.gmra.mrb[34].mxu0 %v1457_v42 }
 0x188   :  { %v2717_v18 = vpop.eup %2716  ;;  %v1221_v27 = vadd.f32 1.0, %v2715_v7  ;;  %2734 = vpow2.f32 %v2222_v50  ;;  %v1462_v3 = vmul.f32 %v1398_v62, %v3385_v20  ;;  %v3444_v25 = vpop.f32.mrb[14].mxu0  ;;  %2580 = vmatpush1.bf16.msra.mxu0 %v2579_v13  ;;  %v2226_v5 = vmul.f32 -1.442695, %v3441_v16  ;;  %v1598_v20 = vld [vmem:[#allocation9 + $0x288] sm:$0xff]  ;;  %v1597_v50 = vld [vmem:[#allocation9 + $0x280] sm:$0xff] }
 0x189   :  { %v2719_v52 = vpop.eup %2718  ;;  %v1401_v60 = vmul.f32 %v2717_v18, %v3367_v22  ;;  %2736 = vrcp.f32 %v1218_v9  ;;  %v3448_v33 = vpop.f32.mrb[15].mxu0  ;;  %2582 = vmatprep.subr.bf16.mxu0 %v2581_v57  ;;  %v2585_v17 = vpack.c.bf16 %v1596_v0, %v1594_v4  ;;  %v2587_v29 = vpack.c.bf16 %v1595_v45, %v1593_v24  ;;  %v1606_v24 = vld [vmem:[#allocation9 + $0x2c8] sm:$0xff]  ;;  %v1608_v45 = vld [vmem:[#allocation9 + $0x2d8] sm:$0xff] }
 0x18a   :  { %2738 = vrcp.f32 %v1221_v27  ;;  %v1222_v47 = vadd.f32 1.0, %v2719_v52  ;;  %v3450_v55 = vpop.f32.mrb[20].mxu1  ;;  %1721 = vmatprep.mubr.f32.mxu0 %v1462_v3  ;;  %v1603_v52 = vld [vmem:[#allocation9 + $0x2b0] sm:$0xff] }
 0x18b   :  { %v2721_v28 = vpop.eup %2720  ;;  %2740 = vpow2.f32 %v2225_v58  ;;  %v2229_v22 = vmul.f32 -1.442695, %v3450_v55  ;;  %v1465_v51 = vmul.f32 %v1401_v60, %v3393_v39  ;;  %v3454_v13 = vpop.f32.mrb[21].mxu1  ;;  %1722 = vmatmul.mubr.f32.gmra.mrb[36].mxu0 %v1461_v6  ;;  %v2589_v39 = vpack.c.bf16 %v1600_v12, %v1598_v20 }
 0x18c   :  { %v2723_v15 = vpop.eup %2722  ;;  %v1402_v14 = vmul.f32 %v2721_v28, %v3370_v36  ;;  %2742 = vrcp.f32 %v1222_v47  ;;  %v2230_v19 = vmul.f32 -1.442695, %v3454_v13  ;;  %v3458_v23 = vpop.f32.mrb[16].mxu0  ;;  %2584 = vmatpush1.bf16.msra.mxu0 %v2583_v44  ;;  %v2591_v6 = vpack.c.bf16 %v1599_v38, %v1597_v50  ;;  %v1601_v44 = vld [vmem:[#allocation9 + $0x2a0] sm:$0xff]  ;;  %v1612_v50 = vld [vmem:[#allocation9 + $0x2f8] sm:$0xff] }
 0x18d   :  { %v2725_v42 = vpop.eup %2724  ;;  %v1405_v34 = vmul.f32 %v2723_v15, %v3377_v26  ;;  %2744 = vpow2.f32 %v2226_v5  ;;  %v3461_v37 = vpop.f32.mrb[17].mxu0  ;;  %2586 = vmatprep.subr.bf16.mxu0 %v2585_v17 }
 0x18e   :  { %v2727_v46 = vpop.eup %2726  ;;  %v1225_v49 = vadd.f32 1.0, %v2725_v42  ;;  %2746 = vpow2.f32 %v2229_v22  ;;  %v1466_v36 = vmul.f32 %v1402_v14, %v3395_v40  ;;  %v3464_v57 = vpop.f32.mrb[22].mxu1  ;;  %v2595_v14 = vpack.c.bf16 %v1603_v52, %v1601_v44  ;;  %v1614_v44 = vld [vmem:[#allocation9 + $0x308] sm:$0xff]  ;;  %v1616_v52 = vld [vmem:[#allocation9 + $0x318] sm:$0xff] }
 0x18f   :  { %v2729_v2 = vpop.eup %2728  ;;  %v1226_v62 = vadd.f32 1.0, %v2727_v46  ;;  %2748 = vpow2.f32 %v2230_v19  ;;  %v2233_v26 = vmul.f32 -1.442695, %v3464_v57  ;;  %v1469_v4 = vmul.f32 %v1405_v34, %v3403_v56  ;;  %v3468_v0 = vpop.f32.mrb[23].mxu1  ;;  %v1605_v19 = vld [vmem:[#allocation9 + $0x2c0] sm:$0xff] }
 0x190   :  { %v2731_v7 = vpop.eup %2730  ;;  %v1406_v9 = vmul.f32 %v2729_v2, %v3380_v10  ;;  %2750 = vrcp.f32 %v1225_v49  ;;  %1727 = vmatprep.mubr.f32.mxu0 %v1466_v36  ;;  %v2234_v40 = vmul.f32 -1.442695, %v3468_v0  ;;  %v3472_v58 = vpop.f32.mrb[18].mxu0  ;;  %2588 = vmatpush1.bf16.msra.mxu0 %v2587_v29  ;;  %v2593_v56 = vpack.c.bf16 %v1604_v59, %v1602_v54 }
 0x191   :  { %v2733_v18 = vpop.eup %2732  ;;  %v1409_v27 = vmul.f32 %v2731_v7, %v3387_v21  ;;  %2752 = vrcp.f32 %v1226_v62  ;;  %1728 = vmatmul.mubr.f32.gmra.mrb[38].mxu0 %v1465_v51  ;;  %v3475_v3 = vpop.f32.mrb[19].mxu0  ;;  %2590 = vmatprep.subr.bf16.mxu0 %v2589_v39  ;;  %v2597_v34 = vpack.c.bf16 %v1608_v45, %v1606_v24  ;;  %v1607_v39 = vld [vmem:[#allocation9 + $0x2d0] sm:$0xff] }
 0x192   :  { %v2735_v10 = vpop.eup %2734  ;;  %v1229_v60 = vadd.f32 1.0, %v2733_v18  ;;  %2754 = vpow2.f32 %v2233_v26  ;;  %v1470_v5 = vmul.f32 %v1406_v9, %v3406_v61  ;;  %v3478_v17 = vpop.f32.mrb[24].mxu1 }
 0x193   :  { %v2737_v47 = vpop.eup %2736  ;;  %v1230_v20 = vadd.f32 1.0, %v2735_v10  ;;  %2756 = vpow2.f32 %v2234_v40  ;;  %v2237_v21 = vmul.f32 -1.442695, %v3478_v17  ;;  %v1473_v12 = vmul.f32 %v1409_v27, %v3417_v32  ;;  %v3482_v28 = vpop.f32.mrb[25].mxu1  ;;  %v1609_v40 = vld [vmem:[#allocation9 + $0x2e0] sm:$0xff] }
 0x194   :  { %v2739_v22 = vpop.eup %2738  ;;  %v1410_v51 = vmul.f32 %v2737_v47, %v3390_v30  ;;  %2758 = vrcp.f32 %v1229_v60  ;;  %1733 = vmatprep.mubr.f32.mxu0 %v1470_v5  ;;  %v2238_v61 = vmul.f32 -1.442695, %v3482_v28  ;;  %v3486_v15 = vpop.f32.mrb[20].mxu0  ;;  %2592 = vmatpush1.bf16.msra.mxu0 %v2591_v6  ;;  %v1610_v30 = vld [vmem:[#allocation9 + $0x2e8] sm:$0xff]  ;;  %v1611_v6 = vld [vmem:[#allocation9 + $0x2f0] sm:$0xff] }
 0x195   :  { %v2741_v29 = vpop.eup %2740  ;;  %v1413_v42 = vmul.f32 %v2739_v22, %v3397_v41  ;;  %2760 = vrcp.f32 %v1230_v20  ;;  %1734 = vmatmul.mubr.f32.gmra.mrb[40].mxu0 %v1469_v4  ;;  %v3489_v32 = vpop.f32.mrb[21].mxu0  ;;  %2594 = vmatprep.subr.bf16.mxu0 %v2593_v56  ;;  %v2601_v9 = vpack.c.bf16 %v1612_v50, %v1610_v30  ;;  %v2603_v22 = vpack.c.bf16 %v1611_v6, %v1609_v40 }
 0x196   :  { %v2743_v38 = vpop.eup %2742  ;;  %v1233_v46 = vadd.f32 1.0, %v2741_v29  ;;  %2762 = vpow2.f32 %v2237_v21  ;;  %v1474_v49 = vmul.f32 %v1410_v51, %v3420_v1  ;;  %v3492_v36 = vpop.f32.mrb[26].mxu1  ;;  %v2599_v1 = vpack.c.bf16 %v1607_v39, %v1605_v19  ;;  %v1620_v39 = vld [vmem:[#allocation9 + $0x338] sm:$0xff] }
 0x197   :  { %v2745_v54 = vpop.eup %2744  ;;  %v1414_v59 = vmul.f32 %v2743_v38, %v3400_v48  ;;  %2764 = vpow2.f32 %v2238_v61  ;;  %v2241_v41 = vmul.f32 -1.442695, %v3492_v36  ;;  %v1477_v2 = vmul.f32 %v1413_v42, %v3431_v43  ;;  %v3497_v62 = vpop.f32.mrb[27].mxu1  ;;  %v1613_v61 = vld [vmem:[#allocation9 + $0x300] sm:$0xff] }
 0x198   :  { %v2747_v26 = vpop.eup %2746  ;;  %2766 = vrcp.f32 %v1233_v46  ;;  %v1234_v4 = vadd.f32 1.0, %v2745_v54  ;;  %1739 = vmatprep.mubr.f32.mxu0 %v1474_v49  ;;  %v3499_v7 = vpop.f32.mrb[22].mxu0  ;;  %2596 = vmatpush1.bf16.msra.mxu0 %v2595_v14  ;;  %v2242_v27 = vmul.f32 -1.442695, %v3497_v62  ;;  %v2605_v51 = vpack.c.bf16 %v1616_v52, %v1614_v44  ;;  %v1615_v14 = vld [vmem:[#allocation9 + $0x310] sm:$0xff]  ;;  %v1622_v52 = vld [vmem:[#allocation9 + $0x348] sm:$0xff] }
 0x199   :  { %v2749_v18 = vpop.eup %2748  ;;  %v1237_v48 = vadd.f32 1.0, %v2747_v26  ;;  %2768 = vpow2.f32 %v2241_v41  ;;  %v1478_v43 = vmul.f32 %v1414_v59, %v3434_v53  ;;  %1740 = vmatmul.mubr.f32.gmra.mrb[42].mxu0 %v1473_v12  ;;  %v3503_v56 = vpop.f32.mrb[23].mxu0  ;;  %2598 = vmatprep.subr.bf16.mxu0 %v2597_v34 }
 0x19a   :  { %v2751_v10 = vpop.eup %2750  ;;  %2770 = vrcp.f32 %v1234_v4  ;;  %v1238_v60 = vadd.f32 1.0, %v2749_v18  ;;  %v3505_v5 = vpop.f32.mrb[28].mxu1  ;;  %v2607_v4 = vpack.c.bf16 %v1615_v14, %v1613_v61  ;;  %v1617_v18 = vld [vmem:[#allocation9 + $0x320] sm:$0xff] }
 0x19b   :  { %v2753_v24 = vpop.eup %2752  ;;  %v1417_v45 = vmul.f32 %v2751_v10, %v3409_v8  ;;  %2772 = vrcp.f32 %v1237_v48  ;;  %v2245_v47 = vmul.f32 -1.442695, %v3505_v5  ;;  %1745 = vmatprep.mubr.f32.mxu0 %v1478_v43  ;;  %v3509_v20 = vpop.f32.mrb[29].mxu1  ;;  %v1624_v10 = vld [vmem:[#allocation9 + $0x358] sm:$0xff]  ;;  %v1621_v14 = vld [vmem:[#allocation9 + $0x340] sm:$0xff] }
 0x19c   :  { %v2755_v53 = vpop.eup %2754  ;;  %v1418_v21 = vmul.f32 %v2753_v24, %v3413_v35  ;;  %2774 = vrcp.f32 %v1238_v60  ;;  %v3512_v12 = vpop.f32.mrb[24].mxu0  ;;  %2600 = vmatpush1.bf16.msra.mxu0 %v2599_v1  ;;  %v2246_v42 = vmul.f32 -1.442695, %v3509_v20  ;;  %v1618_v35 = vld [vmem:[#allocation9 + $0x328] sm:$0xff] }
 0x19d   :  { %v2757_v19 = vpop.eup %2756  ;;  %v1241_v29 = vadd.f32 1.0, %v2755_v53  ;;  %2776 = vpow2.f32 %v2242_v27  ;;  %v1481_v8 = vmul.f32 %v1417_v45, %v3444_v25  ;;  %1746 = vmatmul.mubr.f32.gmra.mrb[44].mxu0 %v1477_v2  ;;  %v3516_v34 = vpop.f32.mrb[25].mxu0  ;;  %2602 = vmatprep.subr.bf16.mxu0 %v2601_v9 }
 0x19e   :  { %v2759_v30 = vpop.eup %2758  ;;  %v1242_v50 = vadd.f32 1.0, %v2757_v19  ;;  %2778 = vpow2.f32 %v2245_v47  ;;  %v1482_v38 = vmul.f32 %v1418_v21, %v3448_v33  ;;  %v3519_v46 = vpop.f32.mrb[30].mxu1  ;;  %v2609_v33 = vpack.c.bf16 %v1620_v39, %v1618_v35  ;;  %v1623_v19 = vld [vmem:[#allocation9 + $0x350] sm:$0xff]  ;;  %v1626_v35 = vld [vmem:[#allocation9 + $0x368] sm:$0xff]  ;;  %v1628_v39 = vld [vmem:[#allocation9 + $0x378] sm:$0xff] }
 0x19f   :  { %v2761_v49 = vpop.eup %2760  ;;  %v1421_v54 = vmul.f32 %v2759_v30, %v3423_v11  ;;  %2780 = vrcp.f32 %v1241_v29  ;;  %v2249_v25 = vmul.f32 -1.442695, %v3519_v46  ;;  %v3523_v59 = vpop.f32.mrb[31].mxu1 }
 0x1a0   :  { %v2763_v41 = vpop.eup %2762  ;;  %v1422_v2 = vmul.f32 %v2761_v49, %v3427_v31  ;;  %2782 = vrcp.f32 %v1242_v50  ;;  %1751 = vmatprep.mubr.f32.mxu0 %v1482_v38  ;;  %v3526_v26 = vpop.f32.mrb[26].mxu0  ;;  %2604 = vmatpush1.bf16.msra.mxu0 %v2603_v22  ;;  %v2250_v40 = vmul.f32 -1.442695, %v3523_v59  ;;  %v1619_v31 = vld [vmem:[#allocation9 + $0x330] sm:$0xff] }
 0x1a1   :  { %v2765_v1 = vpop.eup %2764  ;;  %v1245_v9 = vadd.f32 1.0, %v2763_v41  ;;  %2784 = vpow2.f32 %v2246_v42  ;;  %v1485_v11 = vmul.f32 %v1421_v54, %v3458_v23  ;;  %1752 = vmatmul.mubr.f32.gmra.mrb[46].mxu0 %v1481_v8  ;;  %v3530_v6 = vpop.f32.mrb[27].mxu0  ;;  %2606 = vmatprep.subr.bf16.mxu0 %v2605_v51  ;;  %v2611_v21 = vpack.c.bf16 %v1619_v31, %v1617_v18  ;;  %v1632_v18 = vld [vmem:[#allocation9 + $0x398] sm:$0xff] }
 0x1a2   :  { %v2767_v48 = vpop.eup %2766  ;;  %v1246_v27 = vadd.f32 1.0, %v2765_v1  ;;  %2786 = vpow2.f32 %v2249_v25  ;;  %v1486_v43 = vmul.f32 %v1422_v2, %v3461_v37  ;;  %v3533_v44 = vpop.f32.mrb[32].mxu1  ;;  %v1627_v1 = vld [vmem:[#allocation9 + $0x370] sm:$0xff] }
 0x1a3   :  { %v2769_v60 = vpop.eup %2768  ;;  %v1425_v23 = vmul.f32 %v2767_v48, %v3437_v63  ;;  %2788 = vrcp.f32 %v1245_v9  ;;  %v3536_v24 = vpop.f32.mrb[33].mxu1  ;;  %v2613_v63 = vpack.c.bf16 %v1624_v10, %v1622_v52 }
 0x1a4   :  { %v2771_v45 = vpop.eup %2770  ;;  %2790 = vrcp.f32 %v1246_v27  ;;  %v1249_v47 = vadd.f32 1.0, %v2769_v60  ;;  %1757 = vmatprep.mubr.f32.mxu0 %v1486_v43  ;;  %v3538_v53 = vpop.f32.mrb[28].mxu0  ;;  %2608 = vmatpush1.bf16.msra.mxu0 %v2607_v4 }
 0x1a5   :  { %v2773_v22 = vpop.eup %2772  ;;  %v1426_v37 = vmul.f32 %v2771_v45, %v3441_v16  ;;  %2792 = vpow2.f32 %v2250_v40  ;;  %v1489_v51 = vmul.f32 %v1425_v23, %v3472_v58  ;;  %1758 = vmatmul.mubr.f32.gmra.mrb[48].mxu0 %v1485_v11  ;;  %v3542_v61 = vpop.f32.mrb[29].mxu0  ;;  %2610 = vmatprep.subr.bf16.mxu0 %v2609_v33  ;;  %v1630_v40 = vld [vmem:[#allocation9 + $0x388] sm:$0xff] }
 0x1a6   :  { %v2775_v29 = vpop.eup %2774  ;;  %v1429_v8 = vmul.f32 %v2773_v22, %v3450_v55  ;;  %2794 = vrcp.f32 %v1249_v47  ;;  %v3545_v42 = vpop.f32.mrb[34].mxu1  ;;  %v2615_v55 = vpack.c.bf16 %v1623_v19, %v1621_v14  ;;  %v2621_v45 = vpack.c.bf16 %v1632_v18, %v1630_v40  ;;  %v1629_v47 = vld [vmem:[#allocation9 + $0x380] sm:$0xff] }
 0x1a7   :  { %v2777_v30 = vpop.eup %2776  ;;  %v1430_v16 = vmul.f32 %v2775_v29, %v3454_v13  ;;  %v1490_v58 = vmul.f32 %v1426_v37, %v3475_v3  ;;  %v3549_v50 = vpop.f32.mrb[35].mxu1  ;;  %v2617_v13 = vpack.c.bf16 %v1628_v39, %v1626_v35  ;;  %v1625_v3 = vld [vmem:[#allocation9 + $0x360] sm:$0xff] }
 0x1a8   :  { %v2779_v38 = vpop.eup %2778  ;;  %v1250_v49 = vadd.f32 1.0, %v2777_v30  ;;  %v1493_v54 = vmul.f32 %v1429_v8, %v3486_v15  ;;  %v3552_v25 = vpop.f32.mrb[30].mxu0  ;;  %2612 = vmatpush1.bf16.msra.mxu0 %v2611_v21  ;;  %v2619_v10 = vpack.c.bf16 %v1627_v1, %v1625_v3  ;;  %v1631_v21 = vld [vmem:[#allocation9 + $0x390] sm:$0xff] }
 0x1a9   :  { %v2781_v41 = vpop.eup %2780  ;;  %v1253_v2 = vadd.f32 1.0, %v2779_v38  ;;  %1763 = vmatprep.mubr.f32.mxu0 %v1490_v58  ;;  %v1494_v4 = vmul.f32 %v1430_v16, %v3489_v32  ;;  %v3555_v33 = vpop.f32.mrb[31].mxu0  ;;  %2614 = vmatprep.subr.bf16.mxu0 %v2613_v63  ;;  %v1636_v63 = vld [vmem:[#allocation9 + $0x3b8] sm:$0xff]  ;;  %v2623_v35 = vpack.c.bf16 %v1631_v21, %v1629_v47  ;;  %v1633_v16 = vld [vmem:[#allocation9 + $0x3a0] sm:$0xff]  ;;  %v1635_v58 = vld [vmem:[#allocation9 + $0x3b0] sm:$0xff] }
 0x1aa   :  { %v2783_v9 = vpop.eup %2782  ;;  %v1433_v11 = vmul.f32 %v2781_v41, %v3464_v57  ;;  %2796 = vrcp.f32 %v1250_v49  ;;  %1764 = vmatmul.mubr.f32.gmra.mrb[50].mxu0 %v1489_v51  ;;  %v3558_v15 = vpop.f32.mrb[36].mxu1  ;;  %v1634_v51 = vld [vmem:[#allocation9 + $0x3a8] sm:$0xff]  ;;  %v1640_v49 = vld [vmem:[#allocation9 + $0x3d8] sm:$0xff]  ;;  %v2191_v47 = vmul.f32 -1.442695, %v3533_v44 }
 0x1ab   :  { %v2785_v31 = vpop.eup %2784  ;;  %v1434_v48 = vmul.f32 %v2783_v9, %v3468_v0  ;;  %2798 = vrcp.f32 %v1253_v2  ;;  %1769 = vmatprep.mubr.f32.mxu0 %v1494_v4  ;;  %v3561_v32 = vpop.f32.mrb[37].mxu1  ;;  %v2625_v30 = vpack.c.bf16 %v1636_v63, %v1634_v51  ;;  %v1638_v38 = vld [vmem:[#allocation9 + $0x3c8] sm:$0xff]  ;;  %v1637_v4 = vld [vmem:[#allocation9 + $0x3c0] sm:$0xff]  ;;  %v2192_v21 = vmul.f32 -1.442695, %v3536_v24 }
 0x1ac   :  { %v2787_v27 = vpop.eup %2786  ;;  %v1254_v43 = vadd.f32 1.0, %v2785_v31  ;;  %v1497_v52 = vmul.f32 %v1433_v11, %v3499_v7  ;;  %2616 = vmatpush1.bf16.msra.mxu0 %v2615_v55  ;;  %v2629_v2 = vpack.c.bf16 %v1640_v49, %v1638_v38  ;;  %v1642_v9 = vld [vmem:[#allocation9 + $0x3e8] sm:$0xff]  ;;  %v2199_v63 = vmul.f32 -1.442695, %v3558_v15 }
 0x1ad   :  { %v2789_v57 = vpop.eup %2788  ;;  %v1257_v60 = vadd.f32 1.0, %v2787_v27  ;;  %v1498_v23 = vmul.f32 %v1434_v48, %v3503_v56  ;;  %2618 = vmatprep.subr.bf16.mxu0 %v2617_v13  ;;  %v1639_v13 = vld [vmem:[#allocation9 + $0x3d0] sm:$0xff] }
 0x1ae   :  { %v2791_v22 = vpop.eup %2790  ;;  %v1437_v0 = vmul.f32 %v2789_v57, %v3478_v17  ;;  %2800 = vrcp.f32 %v1254_v43  ;;  %1770 = vmatmul.mubr.f32.gmra.mrb[52].mxu0 %v1493_v54  ;;  %v3566_v37 = vpop.f32.mrb[38].mxu1  ;;  %v1641_v43 = vld [vmem:[#allocation9 + $0x3e0] sm:$0xff] }
 0x1af   :  { %v2793_v7 = vpop.eup %2792  ;;  %v1438_v14 = vmul.f32 %v2791_v22, %v3482_v28  ;;  %2802 = vrcp.f32 %v1257_v60  ;;  %1775 = vmatprep.mubr.f32.mxu0 %v1498_v23  ;;  %v3569_v19 = vpop.f32.mrb[39].mxu1 }
 0x1b0   :  { %v2795_v56 = vpop.eup %2794  ;;  %v1258_v29 = vadd.f32 1.0, %v2793_v7  ;;  %v1501_v8 = vmul.f32 %v1437_v0, %v3512_v12  ;;  %2620 = vmatpush1.bf16.msra.mxu0 %v2619_v10  ;;  %v2196_v0 = vmul.f32 -1.442695, %v3549_v50 }
 0x1b1   :  { %v1441_v17 = vmul.f32 %v2795_v56, %v3492_v36  ;;  %v1502_v39 = vmul.f32 %v1438_v14, %v3516_v34  ;;  %2622 = vmatprep.subr.bf16.mxu0 %v2621_v45  ;;  %v2627_v36 = vpack.c.bf16 %v1635_v58, %v1633_v16  ;;  %v2203_v56 = vmul.f32 -1.442695, %v3566_v37 }
 0x1b2   :  { %2804 = vrcp.f32 %v1258_v29  ;;  %1776 = vmatmul.mubr.f32.gmra.mrb[54].mxu0 %v1497_v52  ;;  %v3574_v28 = vpop.f32.mrb[40].mxu1  ;;  %v1643_v52 = vld [vmem:[#allocation9 + $0x3f0] sm:$0xff]  ;;  %v2204_v29 = vmul.f32 -1.442695, %v3569_v19 }
 0x1b3   :  { %v1505_v54 = vmul.f32 %v1441_v17, %v3526_v26  ;;  %1781 = vmatprep.mubr.f32.mxu0 %v1502_v39  ;;  %v3577_v12 = vpop.f32.mrb[41].mxu1  ;;  %v1644_v26 = vld [vmem:[#allocation9 + $0x3f8] sm:$0xff]  ;;  %v2635_v45 = vpack.c.bf16 %v1643_v52, %v1641_v43  ;;  %2806 = vpow2.f32 %v2191_v47 }
 0x1b4   :  { %v2797_v55 = vpop.eup %2796  ;;  %2624 = vmatpush1.bf16.msra.mxu0 %v2623_v35  ;;  %2808 = vpow2.f32 %v2192_v21  ;;  %v2208_v16 = vmul.f32 -1.442695, %v3577_v12 }
 0x1b5   :  { %v2799_v41 = vpop.eup %2798  ;;  %v1442_v34 = vmul.f32 %v2797_v55, %v3497_v62  ;;  %2626 = vmatprep.subr.bf16.mxu0 %v2625_v30  ;;  %v2631_v62 = vpack.c.bf16 %v1639_v13, %v1637_v4  ;;  %v2207_v30 = vmul.f32 -1.442695, %v3574_v28 }
 0x1b6   :  { %v1445_v3 = vmul.f32 %v2799_v41, %v3505_v5  ;;  %1782 = vmatmul.mubr.f32.gmra.mrb[56].mxu0 %v1501_v8  ;;  %v3581_v1 = vpop.f32.mrb[42].mxu1  ;;  %v2633_v5 = vpack.c.bf16 %v1644_v26, %v1642_v9 }
 0x1b7   :  { %v1506_v11 = vmul.f32 %v1442_v34, %v3530_v6  ;;  %v3584_v40 = vpop.f32.mrb[43].mxu1  ;;  %v2211_v41 = vmul.f32 -1.442695, %v3581_v1 }
 0x1b8   :  { %v2801_v18 = vpop.eup %2800  ;;  %v1509_v31 = vmul.f32 %v1445_v3, %v3538_v53  ;;  %2628 = vmatpush1.bf16.msra.mxu0 %v2627_v36  ;;  %v2212_v34 = vmul.f32 -1.442695, %v3584_v40 }
 0x1b9   :  { %v2803_v48 = vpop.eup %2802  ;;  %v1446_v27 = vmul.f32 %v2801_v18, %v3509_v20  ;;  %1787 = vmatprep.mubr.f32.mxu0 %v1506_v11  ;;  %2630 = vmatprep.subr.bf16.mxu0 %v2629_v2 }
 0x1ba   :  { %v1449_v10 = vmul.f32 %v2803_v48, %v3519_v46  ;;  %1788 = vmatmul.mubr.f32.gmra.mrb[58].mxu0 %v1505_v54  ;;  %v3589_v57 = vpop.f32.mrb[44].mxu1 }
 0x1bb   :  { %v1510_v6 = vmul.f32 %v1446_v27, %v3542_v61  ;;  %v3592_v60 = vpop.f32.mrb[45].mxu1  ;;  %v2215_v11 = vmul.f32 -1.442695, %v3589_v57 }
 0x1bc   :  { %v2805_v53 = vpop.eup %2804  ;;  %v1513_v23 = vmul.f32 %v1449_v10, %v3552_v25  ;;  %2632 = vmatpush1.bf16.msra.mxu0 %v2631_v62  ;;  %v2195_v25 = vmul.f32 -1.442695, %v3545_v42 }
 0x1bd   :  { %v1450_v20 = vmul.f32 %v2805_v53, %v3523_v59  ;;  %1793 = vmatprep.mubr.f32.mxu0 %v1510_v6  ;;  %2634 = vmatprep.subr.bf16.mxu0 %v2633_v5  ;;  %v2807_v17 = vpop.eup %2806 }
 0x1be   :  { %1794 = vmatmul.mubr.f32.gmra.mrb[60].mxu0 %v1509_v31  ;;  %v3597_v46 = vpop.f32.mrb[46].mxu1  ;;  %2810 = vpow2.f32 %v2195_v25  ;;  %v2809_v39 = vpop.eup %2808  ;;  %v1199_v38 = vadd.f32 1.0, %v2807_v17  ;;  %v2216_v31 = vmul.f32 -1.442695, %v3592_v60 }
 0x1bf   :  { %v1514_v61 = vmul.f32 %v1450_v20, %v3555_v33  ;;  %v3601_v22 = vpop.f32.mrb[47].mxu1  ;;  %2812 = vpow2.f32 %v2196_v0  ;;  %v2200_v33 = vmul.f32 -1.442695, %v3561_v32  ;;  %v1200_v55 = vadd.f32 1.0, %v2809_v39 }
 0x1c0   :  { %2636 = vmatpush1.bf16.msra.mxu0 %v2635_v45  ;;  %2814 = vpow2.f32 %v2199_v63  ;;  %v2219_v10 = vmul.f32 -1.442695, %v3597_v46  ;;  %v2220_v47 = vmul.f32 -1.442695, %v3601_v22 }
 0x1c1   :  { %1799 = vmatprep.mubr.f32.mxu0 %v1514_v61  ;;  %2816 = vpow2.f32 %v2200_v33 }
 0x1c2   :  { %1800 = vmatmul.mubr.f32.gmra.mrb[62].mxu0 %v1513_v23  ;;  %v3604_v59 = vpop.f32.mrb[48].mxu1  ;;  %2818 = vpow2.f32 %v2203_v56 }
 0x1c3   :  { %v3607_v51 = vpop.f32.mrb[49].mxu1  ;;  %2820 = vpow2.f32 %v2204_v29  ;;  %v2223_v61 = vmul.f32 -1.442695, %v3604_v59 }
 0x1c4   :  { %2822 = vpow2.f32 %v2207_v30  ;;  %v2224_v39 = vmul.f32 -1.442695, %v3607_v51 }
 0x1c5   :  { %2824 = vpow2.f32 %v2208_v16 }
 0x1c6   :  { %v3610_v7 = vpop.f32.mrb[50].mxu1  ;;  %2826 = vrcp.f32 %v1199_v38 }
 0x1c7   :  { %v3613_v14 = vpop.f32.mrb[51].mxu1  ;;  %2828 = vrcp.f32 %v1200_v55  ;;  %v2227_v38 = vmul.f32 -1.442695, %v3610_v7 }
 0x1c8   :  { %v2811_v54 = vpop.eup %2810  ;;  %2830 = vpow2.f32 %v2211_v41 }
 0x1c9   :  { %v2813_v36 = vpop.eup %2812  ;;  %v1203_v4 = vadd.f32 1.0, %v2811_v54  ;;  %2832 = vpow2.f32 %v2212_v34 }
 0x1ca   :  { %v3617_v8 = vpop.f32.mrb[52].mxu1  ;;  %v2815_v3 = vpop.eup %2814  ;;  %v1204_v9 = vadd.f32 1.0, %v2813_v36 }
 0x1cb   :  { %v3619_v35 = vpop.f32.mrb[53].mxu1  ;;  %v2817_v26 = vpop.eup %2816  ;;  %2834 = vrcp.f32 %v1203_v4  ;;  %v1207_v48 = vadd.f32 1.0, %v2815_v3 }
 0x1cc   :  { %v2819_v18 = vpop.eup %2818  ;;  %2836 = vrcp.f32 %v1204_v9  ;;  %v1208_v43 = vadd.f32 1.0, %v2817_v26 }
 0x1cd   :  { %v2821_v5 = vpop.eup %2820  ;;  %v1211_v52 = vadd.f32 1.0, %v2819_v18  ;;  %2838 = vpow2.f32 %v2215_v11  ;;  %v2228_v11 = vmul.f32 -1.442695, %v3613_v14 }
 0x1ce   :  { %v3623_v58 = vpop.f32.mrb[54].mxu1  ;;  %2840 = vpow2.f32 %v2216_v31  ;;  %v2823_v53 = vpop.eup %2822  ;;  %v1212_v23 = vadd.f32 1.0, %v2821_v5 }
 0x1cf   :  { %v3625_v49 = vpop.f32.mrb[55].mxu1  ;;  %2842 = vrcp.f32 %v1207_v48  ;;  %v2825_v20 = vpop.eup %2824  ;;  %v1215_v0 = vadd.f32 1.0, %v2823_v53  ;;  %v2231_v48 = vmul.f32 -1.442695, %v3617_v8 }
 0x1d0   :  { %2844 = vrcp.f32 %v1208_v43  ;;  %v2827_v21 = vpop.eup %2826  ;;  %v1216_v56 = vadd.f32 1.0, %v2825_v20 }
 0x1d1   :  { %2846 = vrcp.f32 %v1211_v52  ;;  %v2829_v25 = vpop.eup %2828  ;;  %v1391_v16 = vmul.f32 %v2827_v21, %v3533_v44 }
 0x1d2   :  { %v3629_v2 = vpop.f32.mrb[56].mxu1  ;;  %2848 = vpow2.f32 %v2219_v10  ;;  %v2831_v33 = vpop.eup %2830  ;;  %v1392_v55 = vmul.f32 %v2829_v25, %v3536_v24 }
 0x1d3   :  { %v3631_v13 = vpop.f32.mrb[57].mxu1  ;;  %2850 = vrcp.f32 %v1212_v23  ;;  %v2833_v17 = vpop.eup %2832  ;;  %v1219_v36 = vadd.f32 1.0, %v2831_v33 }
 0x1d4   :  { %2852 = vpow2.f32 %v2220_v47  ;;  %v1220_v4 = vadd.f32 1.0, %v2833_v17 }
 0x1d5   :  { %v2835_v30 = vpop.eup %2834  ;;  %2854 = vpow2.f32 %v2223_v61 }
 0x1d6   :  { %v3635_v62 = vpop.f32.mrb[58].mxu1  ;;  %v2837_v54 = vpop.eup %2836  ;;  %2856 = vrcp.f32 %v1215_v0  ;;  %v1395_v31 = vmul.f32 %v2835_v30, %v3545_v42  ;;  %v2232_v42 = vmul.f32 -1.442695, %v3619_v35 }
 0x1d7   :  { %v3637_v27 = vpop.f32.mrb[59].mxu1  ;;  %v2839_v34 = vpop.eup %2838  ;;  %2858 = vrcp.f32 %v1216_v56  ;;  %v1396_v5 = vmul.f32 %v2837_v54, %v3549_v50  ;;  %v2235_v50 = vmul.f32 -1.442695, %v3623_v58  ;;  %v2236_v54 = vmul.f32 -1.442695, %v3625_v49 }
 0x1d8   :  { %v2841_v26 = vpop.eup %2840  ;;  %2860 = vpow2.f32 %v2224_v39  ;;  %v1223_v43 = vadd.f32 1.0, %v2839_v34 }
 0x1d9   :  { %v2843_v44 = vpop.eup %2842  ;;  %2862 = vpow2.f32 %v2227_v38  ;;  %v1224_v53 = vadd.f32 1.0, %v2841_v26  ;;  %v2239_v26 = vmul.f32 -1.442695, %v3629_v2 }
 0x1da   :  { %v3640_v6 = vpop.f32.mrb[60].mxu1  ;;  %v2845_v24 = vpop.eup %2844  ;;  %2864 = vrcp.f32 %v1219_v36  ;;  %v1399_v25 = vmul.f32 %v2843_v44, %v3558_v15 }
 0x1db   :  { %v3642_v45 = vpop.f32.mrb[61].mxu1  ;;  %v2847_v10 = vpop.eup %2846  ;;  %2866 = vrcp.f32 %v1220_v4  ;;  %v1400_v33 = vmul.f32 %v2845_v24, %v3561_v32 }
 0x1dc   :  { %v2849_v47 = vpop.eup %2848  ;;  %2868 = vpow2.f32 %v2228_v11  ;;  %v1403_v36 = vmul.f32 %v2847_v10, %v3566_v37 }
 0x1dd   :  { %v2851_v61 = vpop.eup %2850  ;;  %2870 = vpow2.f32 %v2231_v48  ;;  %v1227_v39 = vadd.f32 1.0, %v2849_v47 }
 0x1de   :  { %v3646_v63 = vpop.f32.mrb[62].mxu1  ;;  %v2853_v0 = vpop.eup %2852  ;;  %2872 = vrcp.f32 %v1223_v43  ;;  %v1404_v34 = vmul.f32 %v2851_v61, %v3569_v19 }
 0x1df   :  { %v3648_v29 = vpop.f32.mrb[63].mxu1  ;;  %v2855_v17 = vpop.eup %2854  ;;  %2874 = vrcp.f32 %v1224_v53 }
 0x1e0   :  { %v2857_v38 = vpop.eup %2856  ;;  %2876 = vpow2.f32 %v2232_v42  ;;  %v1231_v4 = vadd.f32 1.0, %v2855_v17 }
 0x1e1   :  { %2878 = vpow2.f32 %v2235_v50  ;;  %v1407_v24 = vmul.f32 %v2857_v38, %v3574_v28  ;;  %v2244_v28 = vmul.f32 -1.442695, %v3637_v27  ;;  %v2248_v38 = vmul.f32 -1.442695, %v3642_v45 }
 0x1e2   :  { %v910_v41 = vpop.f32.mrb[64].mxu1  ;;  %2880 = vrcp.f32 %v1227_v39  ;;  %v2247_v39 = vmul.f32 -1.442695, %v3640_v6 }
 0x1e3   :  { %v1455_v3 = vmul.f32 %v1391_v16, %v910_v41  ;;  %v912_v9 = vpop.f32.mrb[65].mxu1  ;;  %v1228_v41 = vadd.f32 1.0, %v2853_v0  ;;  %2882 = vpow2.f32 %v2236_v54 }
 0x1e4   :  { %v1456_v18 = vmul.f32 %v1392_v55, %v912_v9  ;;  %v2859_v55 = vpop.eup %2858 }
 0x1e5   :  { %v2861_v32 = vpop.eup %2860  ;;  %2884 = vrcp.f32 %v1228_v41  ;;  %v1408_v43 = vmul.f32 %v2859_v55, %v3577_v12 }
 0x1e6   :  { %v916_v52 = vpop.f32.mrb[66].mxu1  ;;  %1870 = vmatprep.mubr.f32.mxu0 %v1456_v18  ;;  %v2863_v9 = vpop.eup %2862  ;;  %v1232_v19 = vadd.f32 1.0, %v2861_v32  ;;  %2886 = vrcp.f32 %v1231_v4  ;;  %v2251_v4 = vmul.f32 -1.442695, %v3646_v63 }
 0x1e7   :  { %v1459_v23 = vmul.f32 %v1395_v31, %v916_v52  ;;  %v918_v20 = vpop.f32.mrb[67].mxu1  ;;  %1871 = vmatmul.mubr.f32.vlgmr.msra.gmra.mrb[32].mxu0 %v1455_v3  ;;  %v2865_v44 = vpop.eup %2864  ;;  %v2240_v31 = vmul.f32 -1.442695, %v3631_v13  ;;  %v1235_v52 = vadd.f32 1.0, %v2863_v9  ;;  %2888 = vpow2.f32 %v2239_v26 }
 0x1e8   :  { %v1460_v21 = vmul.f32 %v1396_v5, %v918_v20  ;;  %v2867_v48 = vpop.eup %2866 }
 0x1e9   :  { %v2869_v5 = vpop.eup %2868  ;;  %2890 = vpow2.f32 %v2240_v31  ;;  %v1412_v0 = vmul.f32 %v2867_v48, %v3584_v40 }
 0x1ea   :  { %v922_v56 = vpop.f32.mrb[68].mxu1  ;;  %1876 = vmatprep.mubr.f32.mxu0 %v1460_v21  ;;  %v2871_v53 = vpop.eup %2870  ;;  %2892 = vrcp.f32 %v1232_v19  ;;  %v1236_v12 = vadd.f32 1.0, %v2869_v5 }
 0x1eb   :  { %v1463_v30 = vmul.f32 %v1399_v25, %v922_v56  ;;  %v924_v16 = vpop.f32.mrb[69].mxu1  ;;  %1877 = vmatmul.mubr.f32.gmra.mrb[34].mxu0 %v1459_v23  ;;  %v2243_v23 = vmul.f32 -1.442695, %v3635_v62  ;;  %v2873_v42 = vpop.eup %2872  ;;  %v1411_v25 = vmul.f32 %v2865_v44, %v3581_v1  ;;  %2894 = vrcp.f32 %v1235_v52 }
 0x1ec   :  { %v1464_v15 = vmul.f32 %v1400_v33, %v924_v16  ;;  %v2875_v61 = vpop.eup %2874  ;;  %v1239_v33 = vadd.f32 1.0, %v2871_v53 }
 0x1ed   :  { %v2877_v50 = vpop.eup %2876  ;;  %2896 = vpow2.f32 %v2243_v23 }
 0x1ee   :  { %v928_v3 = vpop.f32.mrb[70].mxu1  ;;  %1882 = vmatprep.mubr.f32.mxu0 %v1464_v15  ;;  %v2879_v17 = vpop.eup %2878  ;;  %2898 = vpow2.f32 %v2244_v28  ;;  %v1415_v15 = vmul.f32 %v2873_v42, %v3589_v57  ;;  %v1240_v40 = vadd.f32 1.0, %v2877_v50  ;;  %v2252_v57 = vmul.f32 -1.442695, %v3648_v29 }
 0x1ef   :  { %v1467_v11 = vmul.f32 %v1403_v36, %v928_v3  ;;  %v930_v18 = vpop.f32.mrb[71].mxu1  ;;  %1883 = vmatmul.mubr.f32.gmra.mrb[36].mxu0 %v1463_v30  ;;  %v2881_v54 = vpop.eup %2880  ;;  %2900 = vrcp.f32 %v1236_v12  ;;  %v1416_v36 = vmul.f32 %v2875_v61, %v3592_v60  ;;  %v1243_v41 = vadd.f32 1.0, %v2879_v17 }
 0x1f0   :  { %v1468_v37 = vmul.f32 %v1404_v34, %v930_v18  ;;  %v2883_v55 = vpop.eup %2882  ;;  %2902 = vrcp.f32 %v1239_v33  ;;  %v1419_v44 = vmul.f32 %v2881_v54, %v3597_v46 }
 0x1f1   :  { %v2885_v34 = vpop.eup %2884  ;;  %2904 = vpow2.f32 %v2247_v39  ;;  %v1244_v60 = vadd.f32 1.0, %v2883_v55 }
 0x1f2   :  { %v934_v10 = vpop.f32.mrb[72].mxu1  ;;  %1888 = vmatprep.mubr.f32.mxu0 %v1468_v37  ;;  %v2887_v26 = vpop.eup %2886  ;;  %2906 = vpow2.f32 %v2248_v38  ;;  %v1420_v37 = vmul.f32 %v2885_v34, %v3601_v22 }
 0x1f3   :  { %v1471_v20 = vmul.f32 %v1407_v24, %v934_v10  ;;  %v936_v47 = vpop.f32.mrb[73].mxu1  ;;  %1889 = vmatmul.mubr.f32.gmra.mrb[38].mxu0 %v1467_v11  ;;  %v2889_v18 = vpop.eup %2888  ;;  %2908 = vrcp.f32 %v1240_v40  ;;  %v1423_v46 = vmul.f32 %v2887_v26, %v3604_v59 }
 0x1f4   :  { %v1472_v21 = vmul.f32 %v1408_v43, %v936_v47  ;;  %v2891_v31 = vpop.eup %2890  ;;  %2910 = vrcp.f32 %v1243_v41  ;;  %v1247_v52 = vadd.f32 1.0, %v2889_v18 }
 0x1f5   :  { %v2893_v24 = vpop.eup %2892  ;;  %2912 = vpow2.f32 %v2251_v4  ;;  %v1248_v23 = vadd.f32 1.0, %v2891_v31 }
 0x1f6   :  { %v940_v56 = vpop.f32.mrb[74].mxu1  ;;  %1894 = vmatprep.mubr.f32.mxu0 %v1472_v21  ;;  %v2895_v43 = vpop.eup %2894  ;;  %2914 = vpow2.f32 %v2252_v57  ;;  %v1424_v22 = vmul.f32 %v2893_v24, %v3607_v51 }
 0x1f7   :  { %v1475_v30 = vmul.f32 %v1411_v25, %v940_v56  ;;  %v942_v16 = vpop.f32.mrb[75].mxu1  ;;  %1895 = vmatmul.mubr.f32.gmra.mrb[40].mxu0 %v1471_v20  ;;  %v2897_v53 = vpop.eup %2896  ;;  %2916 = vrcp.f32 %v1244_v60 }
 0x1f8   :  { %v1476_v1 = vmul.f32 %v1412_v0, %v942_v16  ;;  %v2899_v20 = vpop.eup %2898  ;;  %2918 = vrcp.f32 %v1247_v52  ;;  %v1251_v25 = vadd.f32 1.0, %v2897_v53  ;;  %v1427_v0 = vmul.f32 %v2895_v43, %v3610_v7 }
 0x1f9   :  { %v2901_v42 = vpop.eup %2900  ;;  %2920 = vrcp.f32 %v1248_v23  ;;  %v1252_v59 = vadd.f32 1.0, %v2899_v20 }
 0x1fa   :  { %v946_v32 = vpop.f32.mrb[76].mxu1  ;;  %1900 = vmatprep.mubr.f32.mxu0 %v1476_v1  ;;  %v2903_v61 = vpop.eup %2902  ;;  %v1428_v56 = vmul.f32 %v2901_v42, %v3613_v14  ;;  %2922 = vrcp.f32 %v1251_v25 }
 0x1fb   :  { %v1479_v3 = vmul.f32 %v1415_v15, %v946_v32  ;;  %v948_v9 = vpop.f32.mrb[77].mxu1  ;;  %1901 = vmatmul.mubr.f32.gmra.mrb[42].mxu0 %v1475_v30  ;;  %v2905_v50 = vpop.eup %2904  ;;  %v1431_v15 = vmul.f32 %v2903_v61, %v3617_v8  ;;  %2924 = vrcp.f32 %v1252_v59 }
 0x1fc   :  { %v1480_v11 = vmul.f32 %v1416_v36, %v948_v9  ;;  %v2907_v33 = vpop.eup %2906  ;;  %v1255_v38 = vadd.f32 1.0, %v2905_v50 }
 0x1fd   :  { %v2909_v51 = vpop.eup %2908  ;;  %v1256_v7 = vadd.f32 1.0, %v2907_v33 }
 0x1fe   :  { %v952_v48 = vpop.f32.mrb[78].mxu1  ;;  %1906 = vmatprep.mubr.f32.mxu0 %v1480_v11  ;;  %v2911_v16 = vpop.eup %2910  ;;  %v1432_v55 = vmul.f32 %v2909_v51, %v3619_v35  ;;  %2926 = vrcp.f32 %v1255_v38 }
 0x1ff   :  { %v1483_v19 = vmul.f32 %v1419_v44, %v952_v48  ;;  %v954_v5 = vpop.f32.mrb[79].mxu1  ;;  %1907 = vmatmul.mubr.f32.gmra.mrb[44].mxu0 %v1479_v3  ;;  %v2913_v54 = vpop.eup %2912  ;;  %v1435_v3 = vmul.f32 %v2911_v16, %v3623_v58  ;;  %2928 = vrcp.f32 %v1256_v7 }
 0x200   :  { %v1484_v10 = vmul.f32 %v1420_v37, %v954_v5  ;;  %v2915_v40 = vpop.eup %2914  ;;  %v1259_v34 = vadd.f32 1.0, %v2913_v54 }
 0x201   :  { %v2917_v14 = vpop.eup %2916  ;;  %v1260_v9 = vadd.f32 1.0, %v2915_v40 }
 0x202   :  { %v958_v47 = vpop.f32.mrb[80].mxu1  ;;  %1912 = vmatprep.mubr.f32.mxu0 %v1484_v10  ;;  %v2919_v26 = vpop.eup %2918  ;;  %v1436_v8 = vmul.f32 %v2917_v14, %v3625_v49  ;;  %2930 = vrcp.f32 %v1259_v34 }
 0x203   :  { %v1487_v28 = vmul.f32 %v1423_v46, %v958_v47  ;;  %v960_v21 = vpop.f32.mrb[81].mxu1  ;;  %1913 = vmatmul.mubr.f32.gmra.mrb[46].mxu0 %v1483_v19  ;;  %v2921_v11 = vpop.eup %2920  ;;  %v1439_v60 = vmul.f32 %v2919_v26, %v3629_v2  ;;  %2932 = vrcp.f32 %v1260_v9 }
 0x204   :  { %v1488_v12 = vmul.f32 %v1424_v22, %v960_v21  ;;  %v2923_v31 = vpop.eup %2922  ;;  %v1440_v37 = vmul.f32 %v2921_v11, %v3631_v13 }
 0x205   :  { %v2925_v48 = vpop.eup %2924  ;;  %v1443_v5 = vmul.f32 %v2923_v31, %v3635_v62 }
 0x206   :  { %v964_v17 = vpop.f32.mrb[82].mxu1  ;;  %1918 = vmatprep.mubr.f32.mxu0 %v1488_v12  ;;  %v1444_v52 = vmul.f32 %v2925_v48, %v3637_v27 }
 0x207   :  { %v1491_v39 = vmul.f32 %v1427_v0, %v964_v17  ;;  %v966_v30 = vpop.f32.mrb[83].mxu1  ;;  %1919 = vmatmul.mubr.f32.gmra.mrb[48].mxu0 %v1487_v28 }
 0x208   :  { %v1492_v1 = vmul.f32 %v1428_v56, %v966_v30  ;;  %v2927_v43 = vpop.eup %2926 }
 0x209   :  { %v2929_v53 = vpop.eup %2928  ;;  %v1447_v13 = vmul.f32 %v2927_v43, %v3640_v6 }
 0x20a   :  { %v970_v36 = vpop.f32.mrb[84].mxu1  ;;  %1924 = vmatprep.mubr.f32.mxu0 %v1492_v1  ;;  %v1448_v22 = vmul.f32 %v2929_v53, %v3642_v45 }
 0x20b   :  { %v1495_v41 = vmul.f32 %v1431_v15, %v970_v36  ;;  %v972_v32 = vpop.f32.mrb[85].mxu1  ;;  %1925 = vmatmul.mubr.f32.gmra.mrb[50].mxu0 %v1491_v39 }
 0x20c   :  { %v1496_v4 = vmul.f32 %v1432_v55, %v972_v32  ;;  %v2931_v20 = vpop.eup %2930 }
 0x20d   :  { %v2933_v42 = vpop.eup %2932  ;;  %v1451_v27 = vmul.f32 %v2931_v20, %v3646_v63 }
 0x20e   :  { %v976_v57 = vpop.f32.mrb[86].mxu1  ;;  %1930 = vmatprep.mubr.f32.mxu0 %v1496_v4  ;;  %v1452_v61 = vmul.f32 %v2933_v42, %v3648_v29 }
 0x20f   :  { %v1499_v35 = vmul.f32 %v1435_v3, %v976_v57  ;;  %v978_v18 = vpop.f32.mrb[87].mxu1  ;;  %1931 = vmatmul.mubr.f32.gmra.mrb[52].mxu0 %v1495_v41 }
 0x210   :  { %v1500_v44 = vmul.f32 %v1436_v8, %v978_v18 }
 0x212   :  { %v982_v58 = vpop.f32.mrb[88].mxu1  ;;  %1936 = vmatprep.mubr.f32.mxu0 %v1500_v44 }
 0x213   :  { %v1503_v24 = vmul.f32 %v1439_v60, %v982_v58  ;;  %v984_v19 = vpop.f32.mrb[89].mxu1  ;;  %1937 = vmatmul.mubr.f32.gmra.mrb[54].mxu0 %v1499_v35 }
 0x214   :  { %v1504_v49 = vmul.f32 %v1440_v37, %v984_v19 }
 0x216   :  { %v988_v10 = vpop.f32.mrb[90].mxu1  ;;  %1942 = vmatprep.mubr.f32.mxu0 %v1504_v49 }
 0x217   :  { %v1507_v2 = vmul.f32 %v1443_v5, %v988_v10  ;;  %v990_v46 = vpop.f32.mrb[91].mxu1  ;;  %1943 = vmatmul.mubr.f32.gmra.mrb[56].mxu0 %v1503_v24 }
 0x218   :  { %v1508_v23 = vmul.f32 %v1444_v52, %v990_v46 }
 0x21a   :  { %v994_v47 = vpop.f32.mrb[92].mxu1  ;;  %1948 = vmatprep.mubr.f32.mxu0 %v1508_v23 }
 0x21b   :  { %v1511_v28 = vmul.f32 %v1447_v13, %v994_v47  ;;  %v996_v62 = vpop.f32.mrb[93].mxu1  ;;  %1949 = vmatmul.mubr.f32.gmra.mrb[58].mxu0 %v1507_v2 }
 0x21c   :  { %v1512_v21 = vmul.f32 %v1448_v22, %v996_v62 }
 0x21e   :  { %v1000_v25 = vpop.f32.mrb[94].mxu1  ;;  %1954 = vmatprep.mubr.f32.mxu0 %v1512_v21 }
 0x21f   :  { %v1515_v12 = vmul.f32 %v1451_v27, %v1000_v25  ;;  %v1002_v50 = vpop.f32.mrb[95].mxu1  ;;  %1955 = vmatmul.mubr.f32.gmra.mrb[60].mxu0 %v1511_v28 }
 0x220   :  { %v1516_v6 = vmul.f32 %v1452_v61, %v1002_v50 }
 0x222   :  { %1960 = vmatprep.mubr.f32.mxu0 %v1516_v6 }
 0x223   :  { %1961 = vmatmul.mubr.f32.gmra.mrb[62].mxu0 %v1515_v12 }
 0x2ba   :  { %v1872_v45 = vpop.f32.mrb[32].mxu0 }
 0x2bb   :  { %2138 = vst [vmem:[#allocation11] sm:$0xff] %v1872_v45  ;;  %v1874_v0 = vpop.f32.mrb[33].mxu0 }
 0x2bc   :  { %2139 = vst [vmem:[#allocation11 + $0x8] sm:$0xff] %v1874_v0 }
 0x2be   :  { %v1878_v59 = vpop.f32.mrb[34].mxu0 }
 0x2bf   :  { %2140 = vst [vmem:[#allocation11 + $0x10] sm:$0xff] %v1878_v59  ;;  %v1880_v33 = vpop.f32.mrb[35].mxu0 }
 0x2c0   :  { %2141 = vst [vmem:[#allocation11 + $0x18] sm:$0xff] %v1880_v33 }
 0x2c2   :  { %v1884_v56 = vpop.f32.mrb[36].mxu0 }
 0x2c3   :  { %2142 = vst [vmem:[#allocation11 + $0x20] sm:$0xff] %v1884_v56  ;;  %v1886_v63 = vpop.f32.mrb[37].mxu0 }
 0x2c4   :  { %2143 = vst [vmem:[#allocation11 + $0x28] sm:$0xff] %v1886_v63 }
 0x2c6   :  { %v1890_v29 = vpop.f32.mrb[38].mxu0 }
 0x2c7   :  { %2144 = vst [vmem:[#allocation11 + $0x30] sm:$0xff] %v1890_v29  ;;  %v1892_v17 = vpop.f32.mrb[39].mxu0 }
 0x2c8   :  { %2145 = vst [vmem:[#allocation11 + $0x38] sm:$0xff] %v1892_v17 }
 0x2ca   :  { %v1896_v51 = vpop.f32.mrb[40].mxu0 }
 0x2cb   :  { %2146 = vst [vmem:[#allocation11 + $0x40] sm:$0xff] %v1896_v51  ;;  %v1898_v39 = vpop.f32.mrb[41].mxu0 }
 0x2cc   :  { %2147 = vst [vmem:[#allocation11 + $0x48] sm:$0xff] %v1898_v39 }
 0x2ce   :  { %v1902_v30 = vpop.f32.mrb[42].mxu0 }
 0x2cf   :  { %2148 = vst [vmem:[#allocation11 + $0x50] sm:$0xff] %v1902_v30  ;;  %v1904_v16 = vpop.f32.mrb[43].mxu0 }
 0x2d0   :  { %2149 = vst [vmem:[#allocation11 + $0x58] sm:$0xff] %v1904_v16 }
 0x2d2   :  { %v1908_v38 = vpop.f32.mrb[44].mxu0 }
 0x2d3   :  { %2150 = vst [vmem:[#allocation11 + $0x60] sm:$0xff] %v1908_v38  ;;  %v1910_v1 = vpop.f32.mrb[45].mxu0 }
 0x2d4   :  { %2151 = vst [vmem:[#allocation11 + $0x68] sm:$0xff] %v1910_v1 }
 0x2d6   :  { %v1914_v54 = vpop.f32.mrb[46].mxu0 }
 0x2d7   :  { %2152 = vst [vmem:[#allocation11 + $0x70] sm:$0xff] %v1914_v54  ;;  %v1916_v15 = vpop.f32.mrb[47].mxu0 }
 0x2d8   :  { %2153 = vst [vmem:[#allocation11 + $0x78] sm:$0xff] %v1916_v15 }
 0x2da   :  { %v1920_v7 = vpop.f32.mrb[48].mxu0 }
 0x2db   :  { %2154 = vst [vmem:[#allocation11 + $0x80] sm:$0xff] %v1920_v7  ;;  %v1922_v40 = vpop.f32.mrb[49].mxu0 }
 0x2dc   :  { %2155 = vst [vmem:[#allocation11 + $0x88] sm:$0xff] %v1922_v40 }
 0x2de   :  { %v1926_v55 = vpop.f32.mrb[50].mxu0 }
 0x2df   :  { %2156 = vst [vmem:[#allocation11 + $0x90] sm:$0xff] %v1926_v55  ;;  %v1928_v36 = vpop.f32.mrb[51].mxu0 }
 0x2e0   :  { %2157 = vst [vmem:[#allocation11 + $0x98] sm:$0xff] %v1928_v36 }
 0x2e2   :  { %v1932_v14 = vpop.f32.mrb[52].mxu0 }
 0x2e3   :  { %2158 = vst [vmem:[#allocation11 + $0xa0] sm:$0xff] %v1932_v14  ;;  %v1934_v41 = vpop.f32.mrb[53].mxu0 }
 0x2e4   :  { %2159 = vst [vmem:[#allocation11 + $0xa8] sm:$0xff] %v1934_v41 }
 0x2e6   :  { %v1938_v32 = vpop.f32.mrb[54].mxu0 }
 0x2e7   :  { %2160 = vst [vmem:[#allocation11 + $0xb0] sm:$0xff] %v1938_v32  ;;  %v1940_v34 = vpop.f32.mrb[55].mxu0 }
 0x2e8   :  { %2161 = vst [vmem:[#allocation11 + $0xb8] sm:$0xff] %v1940_v34 }
 0x2ea   :  { %v1944_v4 = vpop.f32.mrb[56].mxu0 }
 0x2eb   :  { %2162 = vst [vmem:[#allocation11 + $0xc0] sm:$0xff] %v1944_v4  ;;  %v1946_v3 = vpop.f32.mrb[57].mxu0 }
 0x2ec   :  { %2163 = vst [vmem:[#allocation11 + $0xc8] sm:$0xff] %v1946_v3 }
 0x2ee   :  { %v1950_v9 = vpop.f32.mrb[58].mxu0 }
 0x2ef   :  { %2164 = vst [vmem:[#allocation11 + $0xd0] sm:$0xff] %v1950_v9  ;;  %v1952_v26 = vpop.f32.mrb[59].mxu0 }
 0x2f0   :  { %2165 = vst [vmem:[#allocation11 + $0xd8] sm:$0xff] %v1952_v26 }
 0x2f2   :  { %v1956_v8 = vpop.f32.mrb[60].mxu0 }
 0x2f3   :  { %2166 = vst [vmem:[#allocation11 + $0xe0] sm:$0xff] %v1956_v8  ;;  %v1958_v57 = vpop.f32.mrb[61].mxu0 }
 0x2f4   :  { %2167 = vst [vmem:[#allocation11 + $0xe8] sm:$0xff] %v1958_v57 }
 0x2f6   :  { %v1962_v11 = vpop.f32.mrb[62].mxu0 }
 0x2f7   :  { %2168 = vst [vmem:[#allocation11 + $0xf0] sm:$0xff] %v1962_v11  ;;  %v1964_v35 = vpop.f32.mrb[63].mxu0 }
 0x2f8   :  { %2169 = vst [vmem:[#allocation11 + $0xf8] sm:$0xff] %v1964_v35 }
 0x2f9   :  { %3035 = shalt.err (!%p3032_p8)
}
 0x2fa   :  { %s3036_s17 = scalar_lea.hbm %s3716_s4, 4096 }
 0x2fb   :  { %p3037_p9 = scmp.ne.s32.totalorder %s3716_s4, %s3036_s17  ;;  %p3040_p10 = scmp.lt.u32.totalorder %s3036_s17, %s3716_s4 }
 0x2fd   :  { %p3042_p11 = pnand %p3040_p10, %p3037_p9 }
 0x2ff   :  { %3045 = shalt.err (!%p3042_p11)
}
 0x300   :  { %2181 = dma.vmem_to_hbm [thread:$0]  %s2176_s26, 4096, %s3716_s4, [#allocation5], %s3058_s1, %s3058_s1, %s3059_s13  }
 0x301   :  { %3052 = dma.done.wait [#allocation5], 4096  }
 0x302   :  { %3053 = vsyncadd [#allocation5], 4294963200 }
 0x303   :  { %2185 = vsyncpa [#allocation4], 1 }
 0x304   :  { %2186 = vsyncpa [#allocation7], 1 }
 0x305   :  { %2187 = vsyncpa [#allocation10], 1 }
 0x306   :  { %2188 = vsyncpa [#allocation5], 1 }

</bundles_post_ra>
